<compile_context>
chip_gen: v5e
topology: v5e:2x2
jax: 0.10.0
libtpu: 0.0.40
codegen_flags: <defaults>
</compile_context>

<pallas_src>
import functools
import math

import jax
import jax.numpy as jnp
from jax.experimental import pallas as pl
from jax.experimental.pallas import tpu as pltpu


def _vmem_spec():
    return pl.BlockSpec(memory_space=pltpu.MemorySpace.VMEM)


# --------------------------- shared LSTM recurrence ---------------------------
def _lstm_recurrence(x2d_ref, wih_ref, whh_ref, b_ref, h0_ref, c0_ref, y_ref,
                     *, seq_len, batch, hidden):
    """Full-sequence LSTM for one layer.

    x2d_ref: (T*B, D_in) time-major rows (row t*B + b).
    Returns (h_T, c_T) as values. If y_ref is not None, writes per-timestep
    hidden states into y_ref of shape (T, B, H) (time-major).
    """
    T, B, H = seq_len, batch, hidden
    G = 4 * H

    # Hoisted input projection: one big MXU matmul for all timesteps
    # (the only truly sequential matmul is h @ W_hh below).
    gx = (jnp.dot(x2d_ref[...], wih_ref[...], preferred_element_type=jnp.float32)
          + b_ref[...])                                  # (T*B, 4H)

    whh = whh_ref[...]                                   # (H, 4H), loaded once

    # Lane mask marking the tanh ("g") gate region of the (B, 4H) gate tile so
    # activations are one full-vreg sigmoid + one full-vreg tanh + one select.
    lane = jax.lax.broadcasted_iota(jnp.int32, (B, G), 1)
    g_region = (lane >= 2 * H) & (lane < 3 * H)

    h = h0_ref[...]
    c = c0_ref[...]

    # T is small and static -> fully unrolled time loop; every slice / store
    # index below is static (maximally robust lowering + full LLO visibility).
    # TODO(synk): for long sequences, chunk T with a grid axis + lax.fori_loop
    # instead of full unrolling, and double-buffer the gx chunks.
    for t in range(T):
        gates = gx[t * B:(t + 1) * B, :] + jnp.dot(
            h, whh, preferred_element_type=jnp.float32)  # (B, 4H)
        act = jnp.where(g_region, jnp.tanh(gates), jax.nn.sigmoid(gates))
        i_g = act[:, 0 * H:1 * H]
        f_g = act[:, 1 * H:2 * H]
        g_g = act[:, 2 * H:3 * H]
        o_g = act[:, 3 * H:4 * H]
        c = f_g * c + i_g * g_g
        h = o_g * jnp.tanh(c)
        if y_ref is not None:
            y_ref[t] = h.astype(y_ref.dtype)             # time-major per-step write

    return h, c


# ------------------------------ per-layer kernels ------------------------------
def _lstm_layer_kernel(x2d_ref, wih_ref, whh_ref, b_ref, h0_ref, c0_ref,
                       y_ref, hT_ref, cT_ref, *, seq_len, batch, hidden):
    h, c = _lstm_recurrence(x2d_ref, wih_ref, whh_ref, b_ref, h0_ref, c0_ref,
                            y_ref, seq_len=seq_len, batch=batch, hidden=hidden)
    hT_ref[...] = h
    cT_ref[...] = c


def _lstm_last_layer_fc_kernel(x2d_ref, wih_ref, whh_ref, b_ref, h0_ref, c0_ref,
                               fcw_ref, fcb_ref, out_ref, hT_ref, cT_ref, *,
                               seq_len, batch, hidden):
    # Last layer: no y materialization at all; FC head fused here.
    h, c = _lstm_recurrence(x2d_ref, wih_ref, whh_ref, b_ref, h0_ref, c0_ref,
                            None, seq_len=seq_len, batch=batch, hidden=hidden)
    hT_ref[...] = h
    cT_ref[...] = c
    # fc(lstm_out)[:, -1] == h_T @ W_fc + b_fc for the last layer.
    out_ref[...] = (jnp.dot(h, fcw_ref[...], preferred_element_type=jnp.float32)
                    + fcb_ref[...])


# ------------------------------ pallas_call wrappers ----------------------------
def run_lstm_layer(x2d, wih, whh, b, h0, c0, *, seq_len):
    """x2d: (T*B, D_in) time-major rows; returns (y[T,B,H], h_T[B,H], c_T[B,H])."""
    B, H = h0.shape
    kern = functools.partial(_lstm_layer_kernel, seq_len=seq_len, batch=B, hidden=H)
    return pl.pallas_call(
        kern,
        out_shape=(jax.ShapeDtypeStruct((seq_len, B, H), jnp.float32),
                   jax.ShapeDtypeStruct((B, H), jnp.float32),
                   jax.ShapeDtypeStruct((B, H), jnp.float32)),
        in_specs=[_vmem_spec() for _ in range(6)],
        out_specs=(_vmem_spec(), _vmem_spec(), _vmem_spec()),
    )(x2d, wih, whh, b, h0, c0)


def run_lstm_last_layer_fc(x2d, wih, whh, b, h0, c0, fc_w, fc_b, *, seq_len):
    """Last LSTM layer with the FC head fused; returns (out[B,O], h_T, c_T)."""
    B, H = h0.shape
    O = fc_w.shape[1]
    kern = functools.partial(_lstm_last_layer_fc_kernel, seq_len=seq_len, batch=B,
                             hidden=H)
    return pl.pallas_call(
        kern,
        out_shape=(jax.ShapeDtypeStruct((B, O), jnp.float32),
                   jax.ShapeDtypeStruct((B, H), jnp.float32),
                   jax.ShapeDtypeStruct((B, H), jnp.float32)),
        in_specs=[_vmem_spec() for _ in range(8)],
        out_specs=(_vmem_spec(), _vmem_spec(), _vmem_spec()),
    )(x2d, wih, whh, b, h0, c0, fc_w, fc_b)


# ------------------------------- Model forward --------------------------------
@jax.jit
def rnn_forward(params, nn_input, hidden):
    """nn_input: (B, T, D) batch_first; hidden = (h0, c0), each (L, B, H).
    Returns (out[B, O], (h_n[L, B, H], c_n[L, B, H]))."""
    h0, c0 = hidden
    B, T, D = nn_input.shape
    n_layers = len(params["lstm"])

    # One-time, tiny layout change of the raw input to time-major rows
    # (row t*B + b).  All later inter-layer reshapes are contiguous (free);
    # there is no output-side transpose any more.
    layer_rows = jnp.transpose(nn_input, (1, 0, 2)).reshape(T * B, D)

    h_finals, c_finals = [], []
    out = None
    for l, (wih, whh, b) in enumerate(params["lstm"]):
        if l == n_layers - 1:
            out, hT, cT = run_lstm_last_layer_fc(
                layer_rows, wih, whh, b, h0[l], c0[l],
                params["fc_w"], params["fc_b"], seq_len=T)
        else:
            y, hT, cT = run_lstm_layer(layer_rows, wih, whh, b, h0[l], c0[l],
                                       seq_len=T)
            # dropout=0.0 -> identity between layers.
            # TODO(synk): for many layers, fuse the H->H layers into a single
            # pallas_call to avoid the (T,B,H) HBM round-trip per layer.
            layer_rows = y.reshape(T * B, -1)            # contiguous, free
        h_finals.append(hT)
        c_finals.append(cT)

    return out, (jnp.stack(h_finals), jnp.stack(c_finals))


# ---------------------------- Pure-JAX reference ------------------------------
def reference_forward(params, nn_input, hidden):
    h0, c0 = hidden
    layer_in = nn_input
    hs, cs = [], []
    for l, (wih, whh, b) in enumerate(params["lstm"]):
        H = h0.shape[-1]

        def step(carry, x_t, wih=wih, whh=whh, b=b, H=H):
            h, c = carry
            gates = x_t @ wih + h @ whh + b[0]
            i = jax.nn.sigmoid(gates[:, :H])
            f = jax.nn.sigmoid(gates[:, H:2 * H])
            g = jnp.tanh(gates[:, 2 * H:3 * H])
            o = jax.nn.sigmoid(gates[:, 3 * H:])
            c = f * c + i * g
            h = o * jnp.tanh(c)
            return (h, c), h

        (hT, cT), ys = jax.lax.scan(step, (h0[l], c0[l]),
                                    jnp.transpose(layer_in, (1, 0, 2)))
        hs.append(hT)
        cs.append(cT)
        layer_in = jnp.transpose(ys, (1, 0, 2))
    out = layer_in[:, -1, :] @ params["fc_w"] + params["fc_b"][0]
    return out, (jnp.stack(hs), jnp.stack(cs))


# ------------------------------ Parameter setup --------------------------------
def init_params(key, input_size, hidden_dim, output_size, n_layers):
    stdv = 1.0 / math.sqrt(hidden_dim)
    lstm_params = []
    for l in range(n_layers):
        d_in = input_size if l == 0 else hidden_dim
        key, k1, k2, k3 = jax.random.split(key, 4)
        wih = jax.random.uniform(k1, (d_in, 4 * hidden_dim), jnp.float32, -stdv, stdv)
        whh = jax.random.uniform(k2, (hidden_dim, 4 * hidden_dim), jnp.float32, -stdv, stdv)
        # combined bias = b_ih + b_hh (PyTorch adds both)
        b = jax.random.uniform(k3, (1, 4 * hidden_dim), jnp.float32, -2 * stdv, 2 * stdv)
        lstm_params.append((wih, whh, b))
    key, k1, k2 = jax.random.split(key, 3)
    fc_stdv = 1.0 / math.sqrt(hidden_dim)
    fc_w = jax.random.uniform(k1, (hidden_dim, output_size), jnp.float32, -fc_stdv, fc_stdv)
    fc_b = jax.random.uniform(k2, (1, output_size), jnp.float32, -fc_stdv, fc_stdv)
    return {"lstm": lstm_params, "fc_w": fc_w, "fc_b": fc_b}


if __name__ == "__main__":
    # Small, LSTM-module-consistent shapes.
    B, T = 2, 8
    INPUT_SIZE, HIDDEN_DIM, OUTPUT_SIZE, N_LAYERS = 16, 32, 4, 2

    key = jax.random.PRNGKey(0)
    key, kp, kx = jax.random.split(key, 3)
    params = init_params(kp, INPUT_SIZE, HIDDEN_DIM, OUTPUT_SIZE, N_LAYERS)

    x = jax.random.normal(kx, (B, T, INPUT_SIZE), jnp.float32)
    # init_hidden semantics: zero hidden and cell states, (n_layers, B, hidden_dim)
    h0 = jnp.zeros((N_LAYERS, B, HIDDEN_DIM), jnp.float32)
    c0 = jnp.zeros((N_LAYERS, B, HIDDEN_DIM), jnp.float32)

    out, (h_n, c_n) = rnn_forward(params, x, (h0, c0))
    jax.block_until_ready((out, h_n, c_n))

    out_ref, (h_ref, c_ref) = reference_forward(params, x, (h0, c0))
    assert out.shape == (B, OUTPUT_SIZE)
    assert h_n.shape == (N_LAYERS, B, HIDDEN_DIM)
    assert c_n.shape == (N_LAYERS, B, HIDDEN_DIM)
    assert jnp.allclose(out, out_ref, atol=1e-5, rtol=1e-5)
    assert jnp.allclose(h_n, h_ref, atol=1e-5, rtol=1e-5)
    assert jnp.allclose(c_n, c_ref, atol=1e-5, rtol=1e-5)

    print("KERNEL_OK")
</pallas_src>

<mosaic_0001>
module attributes {stable_mosaic.version = 11 : i64} {
  func.func @_lstm_layer_kernel(%arg0: memref<16x16xf32, #tpu.memory_space<vmem>>, %arg1: memref<16x128xf32, #tpu.memory_space<vmem>>, %arg2: memref<32x128xf32, #tpu.memory_space<vmem>>, %arg3: memref<1x128xf32, #tpu.memory_space<vmem>>, %arg4: memref<2x32xf32, #tpu.memory_space<vmem>>, %arg5: memref<2x32xf32, #tpu.memory_space<vmem>>, %arg6: memref<8x2x32xf32, #tpu.memory_space<vmem>>, %arg7: memref<2x32xf32, #tpu.memory_space<vmem>>, %arg8: memref<2x32xf32, #tpu.memory_space<vmem>>) attributes {dimension_semantics = [], scalar_prefetch = 0 : i64, scratch_operands = 0 : i64, tpu.core_type = #tpu.core_type<tc>} {
    %c0 = arith.constant 0 : index
    %c0_0 = arith.constant 0 : index
    %0 = vector.load %arg0[%c0, %c0_0] : memref<16x16xf32, #tpu.memory_space<vmem>>, vector<16x16xf32>
    %c0_1 = arith.constant 0 : index
    %c0_2 = arith.constant 0 : index
    %1 = vector.load %arg1[%c0_1, %c0_2] : memref<16x128xf32, #tpu.memory_space<vmem>>, vector<16x128xf32>
    %cst = arith.constant dense<0.000000e+00> : vector<16x128xf32>
    %2 = tpu.matmul %0, %1, %cst {dimension_numbers = #tpu.dot_dimension_numbers<[1], [0], [0], [1], [0, 0, 1, 1], [], []>} : vector<16x16xf32>, vector<16x128xf32>, vector<16x128xf32> -> vector<16x128xf32>
    %c0_3 = arith.constant 0 : index
    %c0_4 = arith.constant 0 : index
    %3 = vector.load %arg3[%c0_3, %c0_4] : memref<1x128xf32, #tpu.memory_space<vmem>>, vector<1x128xf32>
    %4 = vector.broadcast %3 : vector<1x128xf32> to vector<16x128xf32>
    %5 = arith.addf %2, %4 : vector<16x128xf32>
    %c0_5 = arith.constant 0 : index
    %c0_6 = arith.constant 0 : index
    %6 = vector.load %arg2[%c0_5, %c0_6] : memref<32x128xf32, #tpu.memory_space<vmem>>, vector<32x128xf32>
    %7 = tpu.iota {dimensions = array<i32: 1>} : vector<2x128xi32>
    %c64_i32 = arith.constant 64 : i32
    %8 = vector.broadcast %c64_i32 : i32 to vector<2x128xi32>
    %9 = arith.cmpi sge, %7, %8 : vector<2x128xi32>
    %c96_i32 = arith.constant 96 : i32
    %10 = vector.broadcast %c96_i32 : i32 to vector<2x128xi32>
    %11 = arith.cmpi slt, %7, %10 : vector<2x128xi32>
    %12 = arith.andi %9, %11 : vector<2x128xi1>
    %c0_7 = arith.constant 0 : index
    %c0_8 = arith.constant 0 : index
    %13 = vector.load %arg4[%c0_7, %c0_8] : memref<2x32xf32, #tpu.memory_space<vmem>>, vector<2x32xf32>
    %c0_9 = arith.constant 0 : index
    %c0_10 = arith.constant 0 : index
    %14 = vector.load %arg5[%c0_9, %c0_10] : memref<2x32xf32, #tpu.memory_space<vmem>>, vector<2x32xf32>
    %15 = vector.extract_strided_slice %5 {offsets = [0, 0], sizes = [2, 128], strides = [1, 1]} : vector<16x128xf32> to vector<2x128xf32>
    %cst_11 = arith.constant dense<0.000000e+00> : vector<2x128xf32>
    %16 = tpu.matmul %13, %6, %cst_11 {dimension_numbers = #tpu.dot_dimension_numbers<[1], [0], [0], [1], [0, 0, 1, 1], [], []>} : vector<2x32xf32>, vector<32x128xf32>, vector<2x128xf32> -> vector<2x128xf32>
    %17 = arith.addf %15, %16 : vector<2x128xf32>
    %18 = math.tanh %17 : vector<2x128xf32>
    %19 = arith.negf %17 : vector<2x128xf32>
    %20 = math.exp %19 : vector<2x128xf32>
    %cst_12 = arith.constant 1.000000e+00 : f32
    %21 = vector.broadcast %cst_12 : f32 to vector<2x128xf32>
    %22 = arith.addf %21, %20 : vector<2x128xf32>
    %23 = arith.divf %21, %22 : vector<2x128xf32>
    %24 = arith.select %12, %18, %23 : vector<2x128xi1>, vector<2x128xf32>
    %25 = vector.extract_strided_slice %24 {offsets = [0, 0], sizes = [2, 32], strides = [1, 1]} : vector<2x128xf32> to vector<2x32xf32>
    %26 = vector.extract_strided_slice %24 {offsets = [0, 32], sizes = [2, 32], strides = [1, 1]} : vector<2x128xf32> to vector<2x32xf32>
    %27 = vector.extract_strided_slice %24 {offsets = [0, 64], sizes = [2, 32], strides = [1, 1]} : vector<2x128xf32> to vector<2x32xf32>
    %28 = vector.extract_strided_slice %24 {offsets = [0, 96], sizes = [2, 32], strides = [1, 1]} : vector<2x128xf32> to vector<2x32xf32>
    %29 = arith.mulf %26, %14 : vector<2x32xf32>
    %30 = arith.mulf %25, %27 : vector<2x32xf32>
    %31 = arith.addf %29, %30 : vector<2x32xf32>
    %32 = math.tanh %31 : vector<2x32xf32>
    %33 = arith.mulf %28, %32 : vector<2x32xf32>
    %c0_13 = arith.constant 0 : index
    %c0_14 = arith.constant 0 : index
    %c0_15 = arith.constant 0 : index
    %34 = vector.load %arg6[%c0_13, %c0_14, %c0_15] : memref<8x2x32xf32, #tpu.memory_space<vmem>>, vector<1x2x32xf32>
    %35 = vector.shape_cast %34 : vector<1x2x32xf32> to vector<2x32xf32>
    %36 = vector.shape_cast %33 : vector<2x32xf32> to vector<1x2x32xf32>
    tpu.vector_store %arg6[%c0_13, %c0_14, %c0_15], %36 {strides = array<i32>} : memref<8x2x32xf32, #tpu.memory_space<vmem>>, vector<1x2x32xf32>,
    %37 = vector.extract_strided_slice %5 {offsets = [2, 0], sizes = [2, 128], strides = [1, 1]} : vector<16x128xf32> to vector<2x128xf32>
    %cst_16 = arith.constant dense<0.000000e+00> : vector<2x128xf32>
    %38 = tpu.matmul %33, %6, %cst_16 {dimension_numbers = #tpu.dot_dimension_numbers<[1], [0], [0], [1], [0, 0, 1, 1], [], []>} : vector<2x32xf32>, vector<32x128xf32>, vector<2x128xf32> -> vector<2x128xf32>
    %39 = arith.addf %37, %38 : vector<2x128xf32>
    %40 = math.tanh %39 : vector<2x128xf32>
    %41 = arith.negf %39 : vector<2x128xf32>
    %42 = math.exp %41 : vector<2x128xf32>
    %cst_17 = arith.constant 1.000000e+00 : f32
    %43 = vector.broadcast %cst_17 : f32 to vector<2x128xf32>
    %44 = arith.addf %43, %42 : vector<2x128xf32>
    %45 = arith.divf %43, %44 : vector<2x128xf32>
    %46 = arith.select %12, %40, %45 : vector<2x128xi1>, vector<2x128xf32>
    %47 = vector.extract_strided_slice %46 {offsets = [0, 0], sizes = [2, 32], strides = [1, 1]} : vector<2x128xf32> to vector<2x32xf32>
    %48 = vector.extract_strided_slice %46 {offsets = [0, 32], sizes = [2, 32], strides = [1, 1]} : vector<2x128xf32> to vector<2x32xf32>
    %49 = vector.extract_strided_slice %46 {offsets = [0, 64], sizes = [2, 32], strides = [1, 1]} : vector<2x128xf32> to vector<2x32xf32>
    %50 = vector.extract_strided_slice %46 {offsets = [0, 96], sizes = [2, 32], strides = [1, 1]} : vector<2x128xf32> to vector<2x32xf32>
    %51 = arith.mulf %48, %31 : vector<2x32xf32>
    %52 = arith.mulf %47, %49 : vector<2x32xf32>
    %53 = arith.addf %51, %52 : vector<2x32xf32>
    %54 = math.tanh %53 : vector<2x32xf32>
    %55 = arith.mulf %50, %54 : vector<2x32xf32>
    %c1 = arith.constant 1 : index
    %c0_18 = arith.constant 0 : index
    %c0_19 = arith.constant 0 : index
    %56 = vector.load %arg6[%c1, %c0_18, %c0_19] : memref<8x2x32xf32, #tpu.memory_space<vmem>>, vector<1x2x32xf32>
    %57 = vector.shape_cast %56 : vector<1x2x32xf32> to vector<2x32xf32>
    %58 = vector.shape_cast %55 : vector<2x32xf32> to vector<1x2x32xf32>
    tpu.vector_store %arg6[%c1, %c0_18, %c0_19], %58 {strides = array<i32>} : memref<8x2x32xf32, #tpu.memory_space<vmem>>, vector<1x2x32xf32>,
    %59 = vector.extract_strided_slice %5 {offsets = [4, 0], sizes = [2, 128], strides = [1, 1]} : vector<16x128xf32> to vector<2x128xf32>
    %cst_20 = arith.constant dense<0.000000e+00> : vector<2x128xf32>
    %60 = tpu.matmul %55, %6, %cst_20 {dimension_numbers = #tpu.dot_dimension_numbers<[1], [0], [0], [1], [0, 0, 1, 1], [], []>} : vector<2x32xf32>, vector<32x128xf32>, vector<2x128xf32> -> vector<2x128xf32>
    %61 = arith.addf %59, %60 : vector<2x128xf32>
    %62 = math.tanh %61 : vector<2x128xf32>
    %63 = arith.negf %61 : vector<2x128xf32>
    %64 = math.exp %63 : vector<2x128xf32>
    %cst_21 = arith.constant 1.000000e+00 : f32
    %65 = vector.broadcast %cst_21 : f32 to vector<2x128xf32>
    %66 = arith.addf %65, %64 : vector<2x128xf32>
    %67 = arith.divf %65, %66 : vector<2x128xf32>
    %68 = arith.select %12, %62, %67 : vector<2x128xi1>, vector<2x128xf32>
    %69 = vector.extract_strided_slice %68 {offsets = [0, 0], sizes = [2, 32], strides = [1, 1]} : vector<2x128xf32> to vector<2x32xf32>
    %70 = vector.extract_strided_slice %68 {offsets = [0, 32], sizes = [2, 32], strides = [1, 1]} : vector<2x128xf32> to vector<2x32xf32>
    %71 = vector.extract_strided_slice %68 {offsets = [0, 64], sizes = [2, 32], strides = [1, 1]} : vector<2x128xf32> to vector<2x32xf32>
    %72 = vector.extract_strided_slice %68 {offsets = [0, 96], sizes = [2, 32], strides = [1, 1]} : vector<2x128xf32> to vector<2x32xf32>
    %73 = arith.mulf %70, %53 : vector<2x32xf32>
    %74 = arith.mulf %69, %71 : vector<2x32xf32>
    %75 = arith.addf %73, %74 : vector<2x32xf32>
    %76 = math.tanh %75 : vector<2x32xf32>
    %77 = arith.mulf %72, %76 : vector<2x32xf32>
    %c2 = arith.constant 2 : index
    %c0_22 = arith.constant 0 : index
    %c0_23 = arith.constant 0 : index
    %78 = vector.load %arg6[%c2, %c0_22, %c0_23] : memref<8x2x32xf32, #tpu.memory_space<vmem>>, vector<1x2x32xf32>
    %79 = vector.shape_cast %78 : vector<1x2x32xf32> to vector<2x32xf32>
    %80 = vector.shape_cast %77 : vector<2x32xf32> to vector<1x2x32xf32>
    tpu.vector_store %arg6[%c2, %c0_22, %c0_23], %80 {strides = array<i32>} : memref<8x2x32xf32, #tpu.memory_space<vmem>>, vector<1x2x32xf32>,
    %81 = vector.extract_strided_slice %5 {offsets = [6, 0], sizes = [2, 128], strides = [1, 1]} : vector<16x128xf32> to vector<2x128xf32>
    %cst_24 = arith.constant dense<0.000000e+00> : vector<2x128xf32>
    %82 = tpu.matmul %77, %6, %cst_24 {dimension_numbers = #tpu.dot_dimension_numbers<[1], [0], [0], [1], [0, 0, 1, 1], [], []>} : vector<2x32xf32>, vector<32x128xf32>, vector<2x128xf32> -> vector<2x128xf32>
    %83 = arith.addf %81, %82 : vector<2x128xf32>
    %84 = math.tanh %83 : vector<2x128xf32>
    %85 = arith.negf %83 : vector<2x128xf32>
    %86 = math.exp %85 : vector<2x128xf32>
    %cst_25 = arith.constant 1.000000e+00 : f32
    %87 = vector.broadcast %cst_25 : f32 to vector<2x128xf32>
    %88 = arith.addf %87, %86 : vector<2x128xf32>
    %89 = arith.divf %87, %88 : vector<2x128xf32>
    %90 = arith.select %12, %84, %89 : vector<2x128xi1>, vector<2x128xf32>
    %91 = vector.extract_strided_slice %90 {offsets = [0, 0], sizes = [2, 32], strides = [1, 1]} : vector<2x128xf32> to vector<2x32xf32>
    %92 = vector.extract_strided_slice %90 {offsets = [0, 32], sizes = [2, 32], strides = [1, 1]} : vector<2x128xf32> to vector<2x32xf32>
    %93 = vector.extract_strided_slice %90 {offsets = [0, 64], sizes = [2, 32], strides = [1, 1]} : vector<2x128xf32> to vector<2x32xf32>
    %94 = vector.extract_strided_slice %90 {offsets = [0, 96], sizes = [2, 32], strides = [1, 1]} : vector<2x128xf32> to vector<2x32xf32>
    %95 = arith.mulf %92, %75 : vector<2x32xf32>
    %96 = arith.mulf %91, %93 : vector<2x32xf32>
    %97 = arith.addf %95, %96 : vector<2x32xf32>
    %98 = math.tanh %97 : vector<2x32xf32>
    %99 = arith.mulf %94, %98 : vector<2x32xf32>
    %c3 = arith.constant 3 : index
    %c0_26 = arith.constant 0 : index
    %c0_27 = arith.constant 0 : index
    %100 = vector.load %arg6[%c3, %c0_26, %c0_27] : memref<8x2x32xf32, #tpu.memory_space<vmem>>, vector<1x2x32xf32>
    %101 = vector.shape_cast %100 : vector<1x2x32xf32> to vector<2x32xf32>
    %102 = vector.shape_cast %99 : vector<2x32xf32> to vector<1x2x32xf32>
    tpu.vector_store %arg6[%c3, %c0_26, %c0_27], %102 {strides = array<i32>} : memref<8x2x32xf32, #tpu.memory_space<vmem>>, vector<1x2x32xf32>,
    %103 = vector.extract_strided_slice %5 {offsets = [8, 0], sizes = [2, 128], strides = [1, 1]} : vector<16x128xf32> to vector<2x128xf32>
    %cst_28 = arith.constant dense<0.000000e+00> : vector<2x128xf32>
    %104 = tpu.matmul %99, %6, %cst_28 {dimension_numbers = #tpu.dot_dimension_numbers<[1], [0], [0], [1], [0, 0, 1, 1], [], []>} : vector<2x32xf32>, vector<32x128xf32>, vector<2x128xf32> -> vector<2x128xf32>
    %105 = arith.addf %103, %104 : vector<2x128xf32>
    %106 = math.tanh %105 : vector<2x128xf32>
    %107 = arith.negf %105 : vector<2x128xf32>
    %108 = math.exp %107 : vector<2x128xf32>
    %cst_29 = arith.constant 1.000000e+00 : f32
    %109 = vector.broadcast %cst_29 : f32 to vector<2x128xf32>
    %110 = arith.addf %109, %108 : vector<2x128xf32>
    %111 = arith.divf %109, %110 : vector<2x128xf32>
    %112 = arith.select %12, %106, %111 : vector<2x128xi1>, vector<2x128xf32>
    %113 = vector.extract_strided_slice %112 {offsets = [0, 0], sizes = [2, 32], strides = [1, 1]} : vector<2x128xf32> to vector<2x32xf32>
    %114 = vector.extract_strided_slice %112 {offsets = [0, 32], sizes = [2, 32], strides = [1, 1]} : vector<2x128xf32> to vector<2x32xf32>
    %115 = vector.extract_strided_slice %112 {offsets = [0, 64], sizes = [2, 32], strides = [1, 1]} : vector<2x128xf32> to vector<2x32xf32>
    %116 = vector.extract_strided_slice %112 {offsets = [0, 96], sizes = [2, 32], strides = [1, 1]} : vector<2x128xf32> to vector<2x32xf32>
    %117 = arith.mulf %114, %97 : vector<2x32xf32>
    %118 = arith.mulf %113, %115 : vector<2x32xf32>
    %119 = arith.addf %117, %118 : vector<2x32xf32>
    %120 = math.tanh %119 : vector<2x32xf32>
    %121 = arith.mulf %116, %120 : vector<2x32xf32>
    %c4 = arith.constant 4 : index
    %c0_30 = arith.constant 0 : index
    %c0_31 = arith.constant 0 : index
    %122 = vector.load %arg6[%c4, %c0_30, %c0_31] : memref<8x2x32xf32, #tpu.memory_space<vmem>>, vector<1x2x32xf32>
    %123 = vector.shape_cast %122 : vector<1x2x32xf32> to vector<2x32xf32>
    %124 = vector.shape_cast %121 : vector<2x32xf32> to vector<1x2x32xf32>
    tpu.vector_store %arg6[%c4, %c0_30, %c0_31], %124 {strides = array<i32>} : memref<8x2x32xf32, #tpu.memory_space<vmem>>, vector<1x2x32xf32>,
    %125 = vector.extract_strided_slice %5 {offsets = [10, 0], sizes = [2, 128], strides = [1, 1]} : vector<16x128xf32> to vector<2x128xf32>
    %cst_32 = arith.constant dense<0.000000e+00> : vector<2x128xf32>
    %126 = tpu.matmul %121, %6, %cst_32 {dimension_numbers = #tpu.dot_dimension_numbers<[1], [0], [0], [1], [0, 0, 1, 1], [], []>} : vector<2x32xf32>, vector<32x128xf32>, vector<2x128xf32> -> vector<2x128xf32>
    %127 = arith.addf %125, %126 : vector<2x128xf32>
    %128 = math.tanh %127 : vector<2x128xf32>
    %129 = arith.negf %127 : vector<2x128xf32>
    %130 = math.exp %129 : vector<2x128xf32>
    %cst_33 = arith.constant 1.000000e+00 : f32
    %131 = vector.broadcast %cst_33 : f32 to vector<2x128xf32>
    %132 = arith.addf %131, %130 : vector<2x128xf32>
    %133 = arith.divf %131, %132 : vector<2x128xf32>
    %134 = arith.select %12, %128, %133 : vector<2x128xi1>, vector<2x128xf32>
    %135 = vector.extract_strided_slice %134 {offsets = [0, 0], sizes = [2, 32], strides = [1, 1]} : vector<2x128xf32> to vector<2x32xf32>
    %136 = vector.extract_strided_slice %134 {offsets = [0, 32], sizes = [2, 32], strides = [1, 1]} : vector<2x128xf32> to vector<2x32xf32>
    %137 = vector.extract_strided_slice %134 {offsets = [0, 64], sizes = [2, 32], strides = [1, 1]} : vector<2x128xf32> to vector<2x32xf32>
    %138 = vector.extract_strided_slice %134 {offsets = [0, 96], sizes = [2, 32], strides = [1, 1]} : vector<2x128xf32> to vector<2x32xf32>
    %139 = arith.mulf %136, %119 : vector<2x32xf32>
    %140 = arith.mulf %135, %137 : vector<2x32xf32>
    %141 = arith.addf %139, %140 : vector<2x32xf32>
    %142 = math.tanh %141 : vector<2x32xf32>
    %143 = arith.mulf %138, %142 : vector<2x32xf32>
    %c5 = arith.constant 5 : index
    %c0_34 = arith.constant 0 : index
    %c0_35 = arith.constant 0 : index
    %144 = vector.load %arg6[%c5, %c0_34, %c0_35] : memref<8x2x32xf32, #tpu.memory_space<vmem>>, vector<1x2x32xf32>
    %145 = vector.shape_cast %144 : vector<1x2x32xf32> to vector<2x32xf32>
    %146 = vector.shape_cast %143 : vector<2x32xf32> to vector<1x2x32xf32>
    tpu.vector_store %arg6[%c5, %c0_34, %c0_35], %146 {strides = array<i32>} : memref<8x2x32xf32, #tpu.memory_space<vmem>>, vector<1x2x32xf32>,
    %147 = vector.extract_strided_slice %5 {offsets = [12, 0], sizes = [2, 128], strides = [1, 1]} : vector<16x128xf32> to vector<2x128xf32>
    %cst_36 = arith.constant dense<0.000000e+00> : vector<2x128xf32>
    %148 = tpu.matmul %143, %6, %cst_36 {dimension_numbers = #tpu.dot_dimension_numbers<[1], [0], [0], [1], [0, 0, 1, 1], [], []>} : vector<2x32xf32>, vector<32x128xf32>, vector<2x128xf32> -> vector<2x128xf32>
    %149 = arith.addf %147, %148 : vector<2x128xf32>
    %150 = math.tanh %149 : vector<2x128xf32>
    %151 = arith.negf %149 : vector<2x128xf32>
    %152 = math.exp %151 : vector<2x128xf32>
    %cst_37 = arith.constant 1.000000e+00 : f32
    %153 = vector.broadcast %cst_37 : f32 to vector<2x128xf32>
    %154 = arith.addf %153, %152 : vector<2x128xf32>
    %155 = arith.divf %153, %154 : vector<2x128xf32>
    %156 = arith.select %12, %150, %155 : vector<2x128xi1>, vector<2x128xf32>
    %157 = vector.extract_strided_slice %156 {offsets = [0, 0], sizes = [2, 32], strides = [1, 1]} : vector<2x128xf32> to vector<2x32xf32>
    %158 = vector.extract_strided_slice %156 {offsets = [0, 32], sizes = [2, 32], strides = [1, 1]} : vector<2x128xf32> to vector<2x32xf32>
    %159 = vector.extract_strided_slice %156 {offsets = [0, 64], sizes = [2, 32], strides = [1, 1]} : vector<2x128xf32> to vector<2x32xf32>
    %160 = vector.extract_strided_slice %156 {offsets = [0, 96], sizes = [2, 32], strides = [1, 1]} : vector<2x128xf32> to vector<2x32xf32>
    %161 = arith.mulf %158, %141 : vector<2x32xf32>
    %162 = arith.mulf %157, %159 : vector<2x32xf32>
    %163 = arith.addf %161, %162 : vector<2x32xf32>
    %164 = math.tanh %163 : vector<2x32xf32>
    %165 = arith.mulf %160, %164 : vector<2x32xf32>
    %c6 = arith.constant 6 : index
    %c0_38 = arith.constant 0 : index
    %c0_39 = arith.constant 0 : index
    %166 = vector.load %arg6[%c6, %c0_38, %c0_39] : memref<8x2x32xf32, #tpu.memory_space<vmem>>, vector<1x2x32xf32>
    %167 = vector.shape_cast %166 : vector<1x2x32xf32> to vector<2x32xf32>
    %168 = vector.shape_cast %165 : vector<2x32xf32> to vector<1x2x32xf32>
    tpu.vector_store %arg6[%c6, %c0_38, %c0_39], %168 {strides = array<i32>} : memref<8x2x32xf32, #tpu.memory_space<vmem>>, vector<1x2x32xf32>,
    %169 = vector.extract_strided_slice %5 {offsets = [14, 0], sizes = [2, 128], strides = [1, 1]} : vector<16x128xf32> to vector<2x128xf32>
    %cst_40 = arith.constant dense<0.000000e+00> : vector<2x128xf32>
    %170 = tpu.matmul %165, %6, %cst_40 {dimension_numbers = #tpu.dot_dimension_numbers<[1], [0], [0], [1], [0, 0, 1, 1], [], []>} : vector<2x32xf32>, vector<32x128xf32>, vector<2x128xf32> -> vector<2x128xf32>
    %171 = arith.addf %169, %170 : vector<2x128xf32>
    %172 = math.tanh %171 : vector<2x128xf32>
    %173 = arith.negf %171 : vector<2x128xf32>
    %174 = math.exp %173 : vector<2x128xf32>
    %cst_41 = arith.constant 1.000000e+00 : f32
    %175 = vector.broadcast %cst_41 : f32 to vector<2x128xf32>
    %176 = arith.addf %175, %174 : vector<2x128xf32>
    %177 = arith.divf %175, %176 : vector<2x128xf32>
    %178 = arith.select %12, %172, %177 : vector<2x128xi1>, vector<2x128xf32>
    %179 = vector.extract_strided_slice %178 {offsets = [0, 0], sizes = [2, 32], strides = [1, 1]} : vector<2x128xf32> to vector<2x32xf32>
    %180 = vector.extract_strided_slice %178 {offsets = [0, 32], sizes = [2, 32], strides = [1, 1]} : vector<2x128xf32> to vector<2x32xf32>
    %181 = vector.extract_strided_slice %178 {offsets = [0, 64], sizes = [2, 32], strides = [1, 1]} : vector<2x128xf32> to vector<2x32xf32>
    %182 = vector.extract_strided_slice %178 {offsets = [0, 96], sizes = [2, 32], strides = [1, 1]} : vector<2x128xf32> to vector<2x32xf32>
    %183 = arith.mulf %180, %163 : vector<2x32xf32>
    %184 = arith.mulf %179, %181 : vector<2x32xf32>
    %185 = arith.addf %183, %184 : vector<2x32xf32>
    %186 = math.tanh %185 : vector<2x32xf32>
    %187 = arith.mulf %182, %186 : vector<2x32xf32>
    %c7 = arith.constant 7 : index
    %c0_42 = arith.constant 0 : index
    %c0_43 = arith.constant 0 : index
    %188 = vector.load %arg6[%c7, %c0_42, %c0_43] : memref<8x2x32xf32, #tpu.memory_space<vmem>>, vector<1x2x32xf32>
    %189 = vector.shape_cast %188 : vector<1x2x32xf32> to vector<2x32xf32>
    %190 = vector.shape_cast %187 : vector<2x32xf32> to vector<1x2x32xf32>
    tpu.vector_store %arg6[%c7, %c0_42, %c0_43], %190 {strides = array<i32>} : memref<8x2x32xf32, #tpu.memory_space<vmem>>, vector<1x2x32xf32>,
    %c0_44 = arith.constant 0 : index
    %c0_45 = arith.constant 0 : index
    %191 = vector.load %arg7[%c0_44, %c0_45] : memref<2x32xf32, #tpu.memory_space<vmem>>, vector<2x32xf32>
    tpu.vector_store %arg7[%c0_44, %c0_45], %187 {strides = array<i32>} : memref<2x32xf32, #tpu.memory_space<vmem>>, vector<2x32xf32>,
    %c0_46 = arith.constant 0 : index
    %c0_47 = arith.constant 0 : index
    %192 = vector.load %arg8[%c0_46, %c0_47] : memref<2x32xf32, #tpu.memory_space<vmem>>, vector<2x32xf32>
    tpu.vector_store %arg8[%c0_46, %c0_47], %185 {strides = array<i32>} : memref<2x32xf32, #tpu.memory_space<vmem>>, vector<2x32xf32>,
    return
  }
}

module attributes {stable_mosaic.version = 11 : i64} {
  func.func @_lstm_last_layer_fc_kernel(%arg0: memref<16x32xf32, #tpu.memory_space<vmem>>, %arg1: memref<32x128xf32, #tpu.memory_space<vmem>>, %arg2: memref<32x128xf32, #tpu.memory_space<vmem>>, %arg3: memref<1x128xf32, #tpu.memory_space<vmem>>, %arg4: memref<2x32xf32, #tpu.memory_space<vmem>>, %arg5: memref<2x32xf32, #tpu.memory_space<vmem>>, %arg6: memref<32x4xf32, #tpu.memory_space<vmem>>, %arg7: memref<1x4xf32, #tpu.memory_space<vmem>>, %arg8: memref<2x4xf32, #tpu.memory_space<vmem>>, %arg9: memref<2x32xf32, #tpu.memory_space<vmem>>, %arg10: memref<2x32xf32, #tpu.memory_space<vmem>>) attributes {dimension_semantics = [], scalar_prefetch = 0 : i64, scratch_operands = 0 : i64, tpu.core_type = #tpu.core_type<tc>} {
    %c0 = arith.constant 0 : index
    %c0_0 = arith.constant 0 : index
    %0 = vector.load %arg0[%c0, %c0_0] : memref<16x32xf32, #tpu.memory_space<vmem>>, vector<16x32xf32>
    %c0_1 = arith.constant 0 : index
    %c0_2 = arith.constant 0 : index
    %1 = vector.load %arg1[%c0_1, %c0_2] : memref<32x128xf32, #tpu.memory_space<vmem>>, vector<32x128xf32>
    %cst = arith.constant dense<0.000000e+00> : vector<16x128xf32>
    %2 = tpu.matmul %0, %1, %cst {dimension_numbers = #tpu.dot_dimension_numbers<[1], [0], [0], [1], [0, 0, 1, 1], [], []>} : vector<16x32xf32>, vector<32x128xf32>, vector<16x128xf32> -> vector<16x128xf32>
    %c0_3 = arith.constant 0 : index
    %c0_4 = arith.constant 0 : index
    %3 = vector.load %arg3[%c0_3, %c0_4] : memref<1x128xf32, #tpu.memory_space<vmem>>, vector<1x128xf32>
    %4 = vector.broadcast %3 : vector<1x128xf32> to vector<16x128xf32>
    %5 = arith.addf %2, %4 : vector<16x128xf32>
    %c0_5 = arith.constant 0 : index
    %c0_6 = arith.constant 0 : index
    %6 = vector.load %arg2[%c0_5, %c0_6] : memref<32x128xf32, #tpu.memory_space<vmem>>, vector<32x128xf32>
    %7 = tpu.iota {dimensions = array<i32: 1>} : vector<2x128xi32>
    %c64_i32 = arith.constant 64 : i32
    %8 = vector.broadcast %c64_i32 : i32 to vector<2x128xi32>
    %9 = arith.cmpi sge, %7, %8 : vector<2x128xi32>
    %c96_i32 = arith.constant 96 : i32
    %10 = vector.broadcast %c96_i32 : i32 to vector<2x128xi32>
    %11 = arith.cmpi slt, %7, %10 : vector<2x128xi32>
    %12 = arith.andi %9, %11 : vector<2x128xi1>
    %c0_7 = arith.constant 0 : index
    %c0_8 = arith.constant 0 : index
    %13 = vector.load %arg4[%c0_7, %c0_8] : memref<2x32xf32, #tpu.memory_space<vmem>>, vector<2x32xf32>
    %c0_9 = arith.constant 0 : index
    %c0_10 = arith.constant 0 : index
    %14 = vector.load %arg5[%c0_9, %c0_10] : memref<2x32xf32, #tpu.memory_space<vmem>>, vector<2x32xf32>
    %15 = vector.extract_strided_slice %5 {offsets = [0, 0], sizes = [2, 128], strides = [1, 1]} : vector<16x128xf32> to vector<2x128xf32>
    %cst_11 = arith.constant dense<0.000000e+00> : vector<2x128xf32>
    %16 = tpu.matmul %13, %6, %cst_11 {dimension_numbers = #tpu.dot_dimension_numbers<[1], [0], [0], [1], [0, 0, 1, 1], [], []>} : vector<2x32xf32>, vector<32x128xf32>, vector<2x128xf32> -> vector<2x128xf32>
    %17 = arith.addf %15, %16 : vector<2x128xf32>
    %18 = math.tanh %17 : vector<2x128xf32>
    %19 = arith.negf %17 : vector<2x128xf32>
    %20 = math.exp %19 : vector<2x128xf32>
    %cst_12 = arith.constant 1.000000e+00 : f32
    %21 = vector.broadcast %cst_12 : f32 to vector<2x128xf32>
    %22 = arith.addf %21, %20 : vector<2x128xf32>
    %23 = arith.divf %21, %22 : vector<2x128xf32>
    %24 = arith.select %12, %18, %23 : vector<2x128xi1>, vector<2x128xf32>
    %25 = vector.extract_strided_slice %24 {offsets = [0, 0], sizes = [2, 32], strides = [1, 1]} : vector<2x128xf32> to vector<2x32xf32>
    %26 = vector.extract_strided_slice %24 {offsets = [0, 32], sizes = [2, 32], strides = [1, 1]} : vector<2x128xf32> to vector<2x32xf32>
    %27 = vector.extract_strided_slice %24 {offsets = [0, 64], sizes = [2, 32], strides = [1, 1]} : vector<2x128xf32> to vector<2x32xf32>
    %28 = vector.extract_strided_slice %24 {offsets = [0, 96], sizes = [2, 32], strides = [1, 1]} : vector<2x128xf32> to vector<2x32xf32>
    %29 = arith.mulf %26, %14 : vector<2x32xf32>
    %30 = arith.mulf %25, %27 : vector<2x32xf32>
    %31 = arith.addf %29, %30 : vector<2x32xf32>
    %32 = math.tanh %31 : vector<2x32xf32>
    %33 = arith.mulf %28, %32 : vector<2x32xf32>
    %34 = vector.extract_strided_slice %5 {offsets = [2, 0], sizes = [2, 128], strides = [1, 1]} : vector<16x128xf32> to vector<2x128xf32>
    %cst_13 = arith.constant dense<0.000000e+00> : vector<2x128xf32>
    %35 = tpu.matmul %33, %6, %cst_13 {dimension_numbers = #tpu.dot_dimension_numbers<[1], [0], [0], [1], [0, 0, 1, 1], [], []>} : vector<2x32xf32>, vector<32x128xf32>, vector<2x128xf32> -> vector<2x128xf32>
    %36 = arith.addf %34, %35 : vector<2x128xf32>
    %37 = math.tanh %36 : vector<2x128xf32>
    %38 = arith.negf %36 : vector<2x128xf32>
    %39 = math.exp %38 : vector<2x128xf32>
    %cst_14 = arith.constant 1.000000e+00 : f32
    %40 = vector.broadcast %cst_14 : f32 to vector<2x128xf32>
    %41 = arith.addf %40, %39 : vector<2x128xf32>
    %42 = arith.divf %40, %41 : vector<2x128xf32>
    %43 = arith.select %12, %37, %42 : vector<2x128xi1>, vector<2x128xf32>
    %44 = vector.extract_strided_slice %43 {offsets = [0, 0], sizes = [2, 32], strides = [1, 1]} : vector<2x128xf32> to vector<2x32xf32>
    %45 = vector.extract_strided_slice %43 {offsets = [0, 32], sizes = [2, 32], strides = [1, 1]} : vector<2x128xf32> to vector<2x32xf32>
    %46 = vector.extract_strided_slice %43 {offsets = [0, 64], sizes = [2, 32], strides = [1, 1]} : vector<2x128xf32> to vector<2x32xf32>
    %47 = vector.extract_strided_slice %43 {offsets = [0, 96], sizes = [2, 32], strides = [1, 1]} : vector<2x128xf32> to vector<2x32xf32>
    %48 = arith.mulf %45, %31 : vector<2x32xf32>
    %49 = arith.mulf %44, %46 : vector<2x32xf32>
    %50 = arith.addf %48, %49 : vector<2x32xf32>
    %51 = math.tanh %50 : vector<2x32xf32>
    %52 = arith.mulf %47, %51 : vector<2x32xf32>
    %53 = vector.extract_strided_slice %5 {offsets = [4, 0], sizes = [2, 128], strides = [1, 1]} : vector<16x128xf32> to vector<2x128xf32>
    %cst_15 = arith.constant dense<0.000000e+00> : vector<2x128xf32>
    %54 = tpu.matmul %52, %6, %cst_15 {dimension_numbers = #tpu.dot_dimension_numbers<[1], [0], [0], [1], [0, 0, 1, 1], [], []>} : vector<2x32xf32>, vector<32x128xf32>, vector<2x128xf32> -> vector<2x128xf32>
    %55 = arith.addf %53, %54 : vector<2x128xf32>
    %56 = math.tanh %55 : vector<2x128xf32>
    %57 = arith.negf %55 : vector<2x128xf32>
    %58 = math.exp %57 : vector<2x128xf32>
    %cst_16 = arith.constant 1.000000e+00 : f32
    %59 = vector.broadcast %cst_16 : f32 to vector<2x128xf32>
    %60 = arith.addf %59, %58 : vector<2x128xf32>
    %61 = arith.divf %59, %60 : vector<2x128xf32>
    %62 = arith.select %12, %56, %61 : vector<2x128xi1>, vector<2x128xf32>
    %63 = vector.extract_strided_slice %62 {offsets = [0, 0], sizes = [2, 32], strides = [1, 1]} : vector<2x128xf32> to vector<2x32xf32>
    %64 = vector.extract_strided_slice %62 {offsets = [0, 32], sizes = [2, 32], strides = [1, 1]} : vector<2x128xf32> to vector<2x32xf32>
    %65 = vector.extract_strided_slice %62 {offsets = [0, 64], sizes = [2, 32], strides = [1, 1]} : vector<2x128xf32> to vector<2x32xf32>
    %66 = vector.extract_strided_slice %62 {offsets = [0, 96], sizes = [2, 32], strides = [1, 1]} : vector<2x128xf32> to vector<2x32xf32>
    %67 = arith.mulf %64, %50 : vector<2x32xf32>
    %68 = arith.mulf %63, %65 : vector<2x32xf32>
    %69 = arith.addf %67, %68 : vector<2x32xf32>
    %70 = math.tanh %69 : vector<2x32xf32>
    %71 = arith.mulf %66, %70 : vector<2x32xf32>
    %72 = vector.extract_strided_slice %5 {offsets = [6, 0], sizes = [2, 128], strides = [1, 1]} : vector<16x128xf32> to vector<2x128xf32>
    %cst_17 = arith.constant dense<0.000000e+00> : vector<2x128xf32>
    %73 = tpu.matmul %71, %6, %cst_17 {dimension_numbers = #tpu.dot_dimension_numbers<[1], [0], [0], [1], [0, 0, 1, 1], [], []>} : vector<2x32xf32>, vector<32x128xf32>, vector<2x128xf32> -> vector<2x128xf32>
    %74 = arith.addf %72, %73 : vector<2x128xf32>
    %75 = math.tanh %74 : vector<2x128xf32>
    %76 = arith.negf %74 : vector<2x128xf32>
    %77 = math.exp %76 : vector<2x128xf32>
    %cst_18 = arith.constant 1.000000e+00 : f32
    %78 = vector.broadcast %cst_18 : f32 to vector<2x128xf32>
    %79 = arith.addf %78, %77 : vector<2x128xf32>
    %80 = arith.divf %78, %79 : vector<2x128xf32>
    %81 = arith.select %12, %75, %80 : vector<2x128xi1>, vector<2x128xf32>
    %82 = vector.extract_strided_slice %81 {offsets = [0, 0], sizes = [2, 32], strides = [1, 1]} : vector<2x128xf32> to vector<2x32xf32>
    %83 = vector.extract_strided_slice %81 {offsets = [0, 32], sizes = [2, 32], strides = [1, 1]} : vector<2x128xf32> to vector<2x32xf32>
    %84 = vector.extract_strided_slice %81 {offsets = [0, 64], sizes = [2, 32], strides = [1, 1]} : vector<2x128xf32> to vector<2x32xf32>
    %85 = vector.extract_strided_slice %81 {offsets = [0, 96], sizes = [2, 32], strides = [1, 1]} : vector<2x128xf32> to vector<2x32xf32>
    %86 = arith.mulf %83, %69 : vector<2x32xf32>
    %87 = arith.mulf %82, %84 : vector<2x32xf32>
    %88 = arith.addf %86, %87 : vector<2x32xf32>
    %89 = math.tanh %88 : vector<2x32xf32>
    %90 = arith.mulf %85, %89 : vector<2x32xf32>
    %91 = vector.extract_strided_slice %5 {offsets = [8, 0], sizes = [2, 128], strides = [1, 1]} : vector<16x128xf32> to vector<2x128xf32>
    %cst_19 = arith.constant dense<0.000000e+00> : vector<2x128xf32>
    %92 = tpu.matmul %90, %6, %cst_19 {dimension_numbers = #tpu.dot_dimension_numbers<[1], [0], [0], [1], [0, 0, 1, 1], [], []>} : vector<2x32xf32>, vector<32x128xf32>, vector<2x128xf32> -> vector<2x128xf32>
    %93 = arith.addf %91, %92 : vector<2x128xf32>
    %94 = math.tanh %93 : vector<2x128xf32>
    %95 = arith.negf %93 : vector<2x128xf32>
    %96 = math.exp %95 : vector<2x128xf32>
    %cst_20 = arith.constant 1.000000e+00 : f32
    %97 = vector.broadcast %cst_20 : f32 to vector<2x128xf32>
    %98 = arith.addf %97, %96 : vector<2x128xf32>
    %99 = arith.divf %97, %98 : vector<2x128xf32>
    %100 = arith.select %12, %94, %99 : vector<2x128xi1>, vector<2x128xf32>
    %101 = vector.extract_strided_slice %100 {offsets = [0, 0], sizes = [2, 32], strides = [1, 1]} : vector<2x128xf32> to vector<2x32xf32>
    %102 = vector.extract_strided_slice %100 {offsets = [0, 32], sizes = [2, 32], strides = [1, 1]} : vector<2x128xf32> to vector<2x32xf32>
    %103 = vector.extract_strided_slice %100 {offsets = [0, 64], sizes = [2, 32], strides = [1, 1]} : vector<2x128xf32> to vector<2x32xf32>
    %104 = vector.extract_strided_slice %100 {offsets = [0, 96], sizes = [2, 32], strides = [1, 1]} : vector<2x128xf32> to vector<2x32xf32>
    %105 = arith.mulf %102, %88 : vector<2x32xf32>
    %106 = arith.mulf %101, %103 : vector<2x32xf32>
    %107 = arith.addf %105, %106 : vector<2x32xf32>
    %108 = math.tanh %107 : vector<2x32xf32>
    %109 = arith.mulf %104, %108 : vector<2x32xf32>
    %110 = vector.extract_strided_slice %5 {offsets = [10, 0], sizes = [2, 128], strides = [1, 1]} : vector<16x128xf32> to vector<2x128xf32>
    %cst_21 = arith.constant dense<0.000000e+00> : vector<2x128xf32>
    %111 = tpu.matmul %109, %6, %cst_21 {dimension_numbers = #tpu.dot_dimension_numbers<[1], [0], [0], [1], [0, 0, 1, 1], [], []>} : vector<2x32xf32>, vector<32x128xf32>, vector<2x128xf32> -> vector<2x128xf32>
    %112 = arith.addf %110, %111 : vector<2x128xf32>
    %113 = math.tanh %112 : vector<2x128xf32>
    %114 = arith.negf %112 : vector<2x128xf32>
    %115 = math.exp %114 : vector<2x128xf32>
    %cst_22 = arith.constant 1.000000e+00 : f32
    %116 = vector.broadcast %cst_22 : f32 to vector<2x128xf32>
    %117 = arith.addf %116, %115 : vector<2x128xf32>
    %118 = arith.divf %116, %117 : vector<2x128xf32>
    %119 = arith.select %12, %113, %118 : vector<2x128xi1>, vector<2x128xf32>
    %120 = vector.extract_strided_slice %119 {offsets = [0, 0], sizes = [2, 32], strides = [1, 1]} : vector<2x128xf32> to vector<2x32xf32>
    %121 = vector.extract_strided_slice %119 {offsets = [0, 32], sizes = [2, 32], strides = [1, 1]} : vector<2x128xf32> to vector<2x32xf32>
    %122 = vector.extract_strided_slice %119 {offsets = [0, 64], sizes = [2, 32], strides = [1, 1]} : vector<2x128xf32> to vector<2x32xf32>
    %123 = vector.extract_strided_slice %119 {offsets = [0, 96], sizes = [2, 32], strides = [1, 1]} : vector<2x128xf32> to vector<2x32xf32>
    %124 = arith.mulf %121, %107 : vector<2x32xf32>
    %125 = arith.mulf %120, %122 : vector<2x32xf32>
    %126 = arith.addf %124, %125 : vector<2x32xf32>
    %127 = math.tanh %126 : vector<2x32xf32>
    %128 = arith.mulf %123, %127 : vector<2x32xf32>
    %129 = vector.extract_strided_slice %5 {offsets = [12, 0], sizes = [2, 128], strides = [1, 1]} : vector<16x128xf32> to vector<2x128xf32>
    %cst_23 = arith.constant dense<0.000000e+00> : vector<2x128xf32>
    %130 = tpu.matmul %128, %6, %cst_23 {dimension_numbers = #tpu.dot_dimension_numbers<[1], [0], [0], [1], [0, 0, 1, 1], [], []>} : vector<2x32xf32>, vector<32x128xf32>, vector<2x128xf32> -> vector<2x128xf32>
    %131 = arith.addf %129, %130 : vector<2x128xf32>
    %132 = math.tanh %131 : vector<2x128xf32>
    %133 = arith.negf %131 : vector<2x128xf32>
    %134 = math.exp %133 : vector<2x128xf32>
    %cst_24 = arith.constant 1.000000e+00 : f32
    %135 = vector.broadcast %cst_24 : f32 to vector<2x128xf32>
    %136 = arith.addf %135, %134 : vector<2x128xf32>
    %137 = arith.divf %135, %136 : vector<2x128xf32>
    %138 = arith.select %12, %132, %137 : vector<2x128xi1>, vector<2x128xf32>
    %139 = vector.extract_strided_slice %138 {offsets = [0, 0], sizes = [2, 32], strides = [1, 1]} : vector<2x128xf32> to vector<2x32xf32>
    %140 = vector.extract_strided_slice %138 {offsets = [0, 32], sizes = [2, 32], strides = [1, 1]} : vector<2x128xf32> to vector<2x32xf32>
    %141 = vector.extract_strided_slice %138 {offsets = [0, 64], sizes = [2, 32], strides = [1, 1]} : vector<2x128xf32> to vector<2x32xf32>
    %142 = vector.extract_strided_slice %138 {offsets = [0, 96], sizes = [2, 32], strides = [1, 1]} : vector<2x128xf32> to vector<2x32xf32>
    %143 = arith.mulf %140, %126 : vector<2x32xf32>
    %144 = arith.mulf %139, %141 : vector<2x32xf32>
    %145 = arith.addf %143, %144 : vector<2x32xf32>
    %146 = math.tanh %145 : vector<2x32xf32>
    %147 = arith.mulf %142, %146 : vector<2x32xf32>
    %148 = vector.extract_strided_slice %5 {offsets = [14, 0], sizes = [2, 128], strides = [1, 1]} : vector<16x128xf32> to vector<2x128xf32>
    %cst_25 = arith.constant dense<0.000000e+00> : vector<2x128xf32>
    %149 = tpu.matmul %147, %6, %cst_25 {dimension_numbers = #tpu.dot_dimension_numbers<[1], [0], [0], [1], [0, 0, 1, 1], [], []>} : vector<2x32xf32>, vector<32x128xf32>, vector<2x128xf32> -> vector<2x128xf32>
    %150 = arith.addf %148, %149 : vector<2x128xf32>
    %151 = math.tanh %150 : vector<2x128xf32>
    %152 = arith.negf %150 : vector<2x128xf32>
    %153 = math.exp %152 : vector<2x128xf32>
    %cst_26 = arith.constant 1.000000e+00 : f32
    %154 = vector.broadcast %cst_26 : f32 to vector<2x128xf32>
    %155 = arith.addf %154, %153 : vector<2x128xf32>
    %156 = arith.divf %154, %155 : vector<2x128xf32>
    %157 = arith.select %12, %151, %156 : vector<2x128xi1>, vector<2x128xf32>
    %158 = vector.extract_strided_slice %157 {offsets = [0, 0], sizes = [2, 32], strides = [1, 1]} : vector<2x128xf32> to vector<2x32xf32>
    %159 = vector.extract_strided_slice %157 {offsets = [0, 32], sizes = [2, 32], strides = [1, 1]} : vector<2x128xf32> to vector<2x32xf32>
    %160 = vector.extract_strided_slice %157 {offsets = [0, 64], sizes = [2, 32], strides = [1, 1]} : vector<2x128xf32> to vector<2x32xf32>
    %161 = vector.extract_strided_slice %157 {offsets = [0, 96], sizes = [2, 32], strides = [1, 1]} : vector<2x128xf32> to vector<2x32xf32>
    %162 = arith.mulf %159, %145 : vector<2x32xf32>
    %163 = arith.mulf %158, %160 : vector<2x32xf32>
    %164 = arith.addf %162, %163 : vector<2x32xf32>
    %165 = math.tanh %164 : vector<2x32xf32>
    %166 = arith.mulf %161, %165 : vector<2x32xf32>
    %c0_27 = arith.constant 0 : index
    %c0_28 = arith.constant 0 : index
    %167 = vector.load %arg9[%c0_27, %c0_28] : memref<2x32xf32, #tpu.memory_space<vmem>>, vector<2x32xf32>
    tpu.vector_store %arg9[%c0_27, %c0_28], %166 {strides = array<i32>} : memref<2x32xf32, #tpu.memory_space<vmem>>, vector<2x32xf32>,
    %c0_29 = arith.constant 0 : index
    %c0_30 = arith.constant 0 : index
    %168 = vector.load %arg10[%c0_29, %c0_30] : memref<2x32xf32, #tpu.memory_space<vmem>>, vector<2x32xf32>
    tpu.vector_store %arg10[%c0_29, %c0_30], %164 {strides = array<i32>} : memref<2x32xf32, #tpu.memory_space<vmem>>, vector<2x32xf32>,
    %c0_31 = arith.constant 0 : index
    %c0_32 = arith.constant 0 : index
    %169 = vector.load %arg6[%c0_31, %c0_32] : memref<32x4xf32, #tpu.memory_space<vmem>>, vector<32x4xf32>
    %cst_33 = arith.constant dense<0.000000e+00> : vector<2x4xf32>
    %170 = tpu.matmul %166, %169, %cst_33 {dimension_numbers = #tpu.dot_dimension_numbers<[1], [0], [0], [1], [0, 0, 1, 1], [], []>} : vector<2x32xf32>, vector<32x4xf32>, vector<2x4xf32> -> vector<2x4xf32>
    %c0_34 = arith.constant 0 : index
    %c0_35 = arith.constant 0 : index
    %171 = vector.load %arg7[%c0_34, %c0_35] : memref<1x4xf32, #tpu.memory_space<vmem>>, vector<1x4xf32>
    %172 = vector.broadcast %171 : vector<1x4xf32> to vector<2x4xf32>
    %173 = arith.addf %170, %172 : vector<2x4xf32>
    %c0_36 = arith.constant 0 : index
    %c0_37 = arith.constant 0 : index
    %174 = vector.load %arg8[%c0_36, %c0_37] : memref<2x4xf32, #tpu.memory_space<vmem>>, vector<2x4xf32>
    tpu.vector_store %arg8[%c0_36, %c0_37], %173 {strides = array<i32>} : memref<2x4xf32, #tpu.memory_space<vmem>>, vector<2x4xf32>,
    return
  }
}

</mosaic_0001>

<bundles_post_ra>
// kernel: rnn_forward.2
= control target key start
LH: loop header
LB: loop body
LE: loop exit
PB: predicated region body
PF: predicated region fallthrough
CT: control target
= control target key end

     0   :  { %14 = vsyncpa [#allocation3], 0  ;;  %s831_s30 = smov [#allocation2]   ;;  %s832_s10 = smov 128   ;;  %s1044_s0 = inlined_call_operand.vmem [shape: f32[16,16], index: 0, kind: input, shape index: {}]   ;;  %s1045_s1 = inlined_call_operand.hbm [shape: f32[16,128], index: 1, kind: input, shape index: {}]   ;;  %s1046_s2 = inlined_call_operand.vmem [shape: f32[32,128], index: 2, kind: input, shape index: {}]   ;;  %s1047_s3 = inlined_call_operand.vmem [shape: f32[1,128], index: 3, kind: input, shape index: {}]   ;;  %s1048_s4 = inlined_call_operand.vmem [shape: f32[2,32], index: 4, kind: input, shape index: {}]   ;;  %s1049_s5 = inlined_call_operand.vmem [shape: f32[2,32], index: 5, kind: input, shape index: {}]   ;;  %s1050_s6 = inlined_call_operand.vmem [shape: f32[8,2,32], index: 6, kind: output, shape index: {0}]   ;;  %s1051_s7 = inlined_call_operand.vmem [shape: f32[2,32], index: 7, kind: output, shape index: {1}]   ;;  %s1052_s8 = inlined_call_operand.vmem [shape: f32[2,32], index: 8, kind: output, shape index: {2}]  }
   0x1   :  { %s21_s29 = sshll.u32 %s1045_s1, 4  ;;  %s23_s9 = sshll.u32 %s831_s30, 4  ;;  %s22_s29 = int_to_ptr.hbm [resolvable:$true] %s21_s29  ;;  %s24_s9 = int_to_ptr.vmem [resolvable:$true] %s23_s9 }
   0x2   :  { %s833_s11 = smov 8  }
   0x3   :  { %29 = dma.hbm_to_vmem [thread:$0]  %s22_s29, 256, %s24_s9, [#allocation3], %s832_s10, %s832_s10, %s833_s11  }
   0x4   :  { %829 = dma.done.wait [#allocation3], 256  }
   0x5   :  { %830 = vsyncadd [#allocation3], 4294967040  ;;  %v83_v0 = vld [vmem:[%s1046_s2 + $0x18] sm:$0xff]  ;;  %v45_v1 = vld [vmem:[#allocation2 + $0x8] sm:$0xff]  ;;  %vm50_vm0 = vcmask 130048   ;;  %vm91_vm1 = vcmask 261120   ;;  %v84_v16 = vlaneseq }
   0x6   :  { %v82_v2 = vld [vmem:[%s1046_s2 + $0x10] sm:$0xff]  ;;  %107 = vmatpush.msra.mxu1 %v83_v0  ;;  %71 = vmatpush.msra.mxu0 %v45_v1  ;;  %v44_v3 = vld [vmem:[#allocation2] sm:$0xff]  ;;  %v81_v5 = vld [vmem:[%s1046_s2 + $0x8] sm:$0xff]  ;;  %s835_s25 = smov 32   ;;  %vm162_vm9 = vcmask 254976   ;;  %s836_s12 = smov 96  }
   0x7   :  { %v42_v4 = vld [vmem:[%s1044_s0] sm:$0xff]  ;;  %178 = vmatpush.msra.mxu2 %v83_v0  ;;  %255 = vmatpush.msra.mxu3 %v83_v0  ;;  %v85_v18 = vand.u32 127, %v84_v16 }
   0x8   :  { %108 = vmatpush.msra.mxu1 %v82_v2  ;;  %72 = vmatpush.msra.mxu0 %v44_v3  ;;  %v80_v6 = vld [vmem:[%s1046_s2] sm:$0xff] }
   0x9   :  { %709 = vmatmul.msk.f32.vlgmr.msra.gmra.mxu0 %vm50_vm0, %v42_v4  ;;  %179 = vmatpush.msra.mxu2 %v82_v2  ;;  %v89_v7 = vld [vmem:[%s1048_s4] sm:$0x3]  ;;  %vm86_vm2 = vcmp.ge.s32.totalorder %v85_v18, 64  ;;  %vm87_vm3 = vcmp.lt.s32.totalorder %v85_v18, 96 }
   0xa   :  { %109 = vmatpush.msra.mxu1 %v81_v5  ;;  %256 = vmatpush.msra.mxu3 %v82_v2  ;;  %v908_v8 = vld [vmem:[%s1047_s3] ss:$0 sm:$0xff]  ;;  %vm914_vm5 = vmand %vm86_vm2, %vm87_vm3  ;;  %s834_s3 = smov 64  }
   0xb   :  { %180 = vmatpush.msra.mxu2 %v81_v5  ;;  %555 = vmatpush.msrb.mxu0 %v83_v0  ;;  %v90_v31 = vld [vmem:[%s1049_s5] sm:$0x3] }
   0xc   :  { %110 = vmatpush.msra.mxu1 %v80_v6  ;;  %257 = vmatpush.msra.mxu3 %v81_v5 }
   0xd   :  { %711 = vmatmul.msk.f32.vlgmr.msra.gmra.mxu1 %vm91_vm1, %v89_v7  ;;  %181 = vmatpush.msra.mxu2 %v80_v6 }
   0xe   :  { %258 = vmatpush.msra.mxu3 %v80_v6  ;;  %332 = vmatpush.msrb.mxu1 %v83_v0 }
   0xf   :  { %409 = vmatpush.msrb.mxu2 %v83_v0  ;;  %556 = vmatpush.msrb.mxu0 %v82_v2 }
  0x10   :  { %479 = vmatpush.msrb.mxu3 %v83_v0  ;;  %333 = vmatpush.msrb.mxu1 %v82_v2 }
  0x11   :  { %410 = vmatpush.msrb.mxu2 %v82_v2  ;;  %557 = vmatpush.msrb.mxu0 %v81_v5 }
  0x12   :  { %480 = vmatpush.msrb.mxu3 %v82_v2  ;;  %334 = vmatpush.msrb.mxu1 %v81_v5 }
  0x13   :  { %411 = vmatpush.msrb.mxu2 %v81_v5  ;;  %558 = vmatpush.msrb.mxu0 %v80_v6 }
  0x14   :  { %481 = vmatpush.msrb.mxu3 %v81_v5  ;;  %335 = vmatpush.msrb.mxu1 %v80_v6 }
  0x15   :  { %412 = vmatpush.msrb.mxu2 %v80_v6 }
  0x16   :  { %482 = vmatpush.msrb.mxu3 %v80_v6  ;;  %631 = vmatpush.msra.mxu1 %v83_v0 }
  0x18   :  { %632 = vmatpush.msra.mxu1 %v82_v2 }
  0x1a   :  { %633 = vmatpush.msra.mxu1 %v81_v5 }
  0x1c   :  { %634 = vmatpush.msra.mxu1 %v80_v6 }
  0x86   :  { %v74_v9 = vpop.f32.mrf.mxu0 }
  0x87   :  { %v911_v10 = vadd.f32 %v908_v8, %v74_v9 }
  0x8a   :  { %v112_v11 = vpop.f32.mrf.mxu1 }
  0x8b   :  { %v115_v12 = vadd.f32 %v112_v11, %v911_v10 }
  0x8d   :  { %v712_v13 = vmul.f32 -1.442695, %v115_v12 }
  0x8f   :  { %741 = vpow2.f32 %v712_v13 }
  0x95   :  { %v742_v14 = vpop.eup %741 }
  0x96   :  { %v120_v15 = vadd.f32 1.0, %v742_v14 }
  0x98   :  { %743 = vrcp.f32 %v120_v15  ;;  %v132_v21 = vand.u32 2147483648, %v120_v15  ;;  %v130_v23 = vand.u32 2147483647, %v120_v15  ;;  %vm126_vm6 = vweird.f32 %v120_v15 }
  0x99   :  { %745 = vtanh.f32 %v115_v12 }
  0x9a   :  { %v133_v26 = vor.u32 1.1754944e-38, %v132_v21  ;;  %vm131_vm8 = vcmp.eq.f32.partialorder %v130_v23, 8.507059e+37 }
  0x9e   :  { %v744_v17 = vpop.eup %743 }
  0x9f   :  { %v122_v19 = vmul.f32 %v744_v17, %v120_v15  ;;  %vm127_vm4 = vweird.f32 %v744_v17  ;;  %v746_v28 = vpop.eup %745 }
  0xa0   :  { %vm128_vm7 = vmor %vm126_vm6, %vm127_vm4 }
  0xa1   :  { %v123_v20 = vsub.f32 1.0, %v122_v19 }
  0xa3   :  { %v124_v22 = vmul.f32 %v744_v17, %v123_v20 }
  0xa5   :  { %v125_v25 = vadd.f32 %v744_v17, %v124_v22 }
  0xa7   :  { %v129_v27 = vsel %vm128_vm7, %v744_v17, %v125_v25 }
  0xa8   :  { %v134_v29 = vsel %vm131_vm8, %v133_v26, %v129_v27 }
  0xa9   :  { %v136_v30 = vsel %vm914_vm5, %v746_v28, %v134_v29 }
  0xaa   :  { %143 = vrot.lane.b32.xlu0 %v136_v30, %s834_s3 }
  0xb2   :  { %138 = vrot.lane.b32.xlu0 %v90_v31, %s835_s25 }
 0x11c   :  { %v144_v32 = vpop.permute.xlu0 %143 }
 0x11d   :  { %v146_v33 = vmul.f32 %v144_v32, %v136_v30 }
 0x11f   :  { %148 = vrot.lane.b32.xlu1 %v146_v33, %s835_s25 }
 0x124   :  { %v139_v34 = vpop.permute.xlu0 %138 }
 0x125   :  { %v141_v35 = vmul.f32 %v139_v34, %v136_v30 }
 0x191   :  { %v149_v36 = vpop.permute.xlu1 %148 }
 0x192   :  { %v151_v37 = vadd.f32 %v149_v36, %v141_v35 }
 0x194   :  { %747 = vtanh.f32 %v151_v37  ;;  %v212_v62 = vrot.slane %v151_v37, 6 }
 0x19a   :  { %v748_v38 = vpop.eup %747 }
 0x19b   :  { %154 = vrot.lane.b32.xlu1 %v748_v38, %s834_s3 }
 0x20d   :  { %v155_v39 = vpop.permute.xlu1 %154 }
 0x20e   :  { %v157_v40 = vmul.f32 %v155_v39, %v136_v30 }
 0x210   :  { %159 = vrot.lane.b32.xlu2 %v157_v40, %s835_s25 }
 0x26a   :  { %v160_v41 = vpop.permute.xlu2 %159 }
 0x26b   :  { %163 = vst.msk [vmem:[%s1050_s6] sm:$0x3] %vm162_vm9, %v160_v41  ;;  %713 = vmatmul.msk.f32.vlgmr.msra.gmra.mxu2 %vm91_vm1, %v160_v41 }
 0x2ee   :  { %v183_v42 = vpop.f32.mrf.mxu2 }
 0x2ef   :  { %v187_v43 = vrot.slane %v183_v42, 6 }
 0x2f1   :  { %v189_v44 = vadd.f32 %v187_v43, %v911_v10 }
 0x2f3   :  { %v714_v45 = vmul.f32 -1.442695, %v189_v44 }
 0x2f5   :  { %749 = vpow2.f32 %v714_v45 }
 0x2fb   :  { %v750_v46 = vpop.eup %749 }
 0x2fc   :  { %v194_v47 = vadd.f32 1.0, %v750_v46 }
 0x2fe   :  { %751 = vrcp.f32 %v194_v47  ;;  %v206_v51 = vand.u32 2147483648, %v194_v47  ;;  %v204_v53 = vand.u32 2147483647, %v194_v47  ;;  %vm200_vm11 = vweird.f32 %v194_v47 }
 0x2ff   :  { %753 = vtanh.f32 %v189_v44 }
 0x300   :  { %v207_v55 = vor.u32 1.1754944e-38, %v206_v51  ;;  %vm205_vm13 = vcmp.eq.f32.partialorder %v204_v53, 8.507059e+37 }
 0x304   :  { %v752_v48 = vpop.eup %751 }
 0x305   :  { %v196_v49 = vmul.f32 %v752_v48, %v194_v47  ;;  %vm201_vm10 = vweird.f32 %v752_v48  ;;  %v754_v57 = vpop.eup %753 }
 0x306   :  { %vm202_vm12 = vmor %vm200_vm11, %vm201_vm10 }
 0x307   :  { %v197_v50 = vsub.f32 1.0, %v196_v49 }
 0x309   :  { %v198_v52 = vmul.f32 %v752_v48, %v197_v50 }
 0x30b   :  { %v199_v54 = vadd.f32 %v752_v48, %v198_v52 }
 0x30d   :  { %v203_v56 = vsel %vm202_vm12, %v752_v48, %v199_v54 }
 0x30e   :  { %v208_v58 = vsel %vm205_vm13, %v207_v55, %v203_v56 }
 0x30f   :  { %v210_v59 = vsel %vm914_vm5, %v754_v57, %v208_v58 }
 0x310   :  { %216 = vrot.lane.b32.xlu2 %v210_v59, %s834_s3  ;;  %v214_v63 = vmul.f32 %v212_v62, %v210_v59 }
 0x36a   :  { %v217_v60 = vpop.permute.xlu2 %216 }
 0x36b   :  { %v219_v61 = vmul.f32 %v217_v60, %v210_v59 }
 0x36d   :  { %221 = vrot.lane.b32.xlu0 %v219_v61, %s835_s25 }
 0x3df   :  { %v222_v0 = vpop.permute.xlu0 %221 }
 0x3e0   :  { %v224_v1 = vadd.f32 %v222_v0, %v214_v63 }
 0x3e2   :  { %755 = vtanh.f32 %v224_v1  ;;  %v289_v30 = vrot.slane %v224_v1, 6 }
 0x3e8   :  { %v756_v2 = vpop.eup %755 }
 0x3e9   :  { %227 = vrot.lane.b32.xlu1 %v756_v2, %s834_s3  ;;  %v43_v2 = vld [vmem:[%s1044_s0 + $0x8] sm:$0xff] }
 0x3ea   :  { %710 = vmatmul.msk.f32.gmra.mxu0 %vm50_vm0, %v43_v2 }
 0x45b   :  { %v228_v3 = vpop.permute.xlu1 %227 }
 0x45c   :  { %v939_v4 = vmul.f32 %v228_v3, %v210_v59 }
 0x45e   :  { %v238_v5 = vrot.slane %v939_v4, 2 }
 0x460   :  { %239 = vrot.lane.b32.xlu2 %v238_v5, %s835_s25 }
 0x467   :  { %v77_v5 = vpop.f32.mrf.mxu0 }
 0x4ba   :  { %v240_v6 = vpop.permute.xlu2 %239 }
 0x4bb   :  { %716 = vmatmul.msk.f32.vlgmr.msra.gmra.mxu3 %vm91_vm1, %v240_v6  ;;  %v971_v6 = vadd.f32 %v908_v8, %v77_v5 }
 0x53e   :  { %v260_v7 = vpop.f32.mrf.mxu3 }
 0x53f   :  { %v264_v9 = vrot.slane %v260_v7, 4 }
 0x541   :  { %v266_v11 = vadd.f32 %v264_v9, %v911_v10 }
 0x543   :  { %v717_v12 = vmul.f32 -1.442695, %v266_v11 }
 0x545   :  { %757 = vpow2.f32 %v717_v12 }
 0x54b   :  { %v758_v13 = vpop.eup %757 }
 0x54c   :  { %v271_v14 = vadd.f32 1.0, %v758_v13 }
 0x54e   :  { %759 = vrcp.f32 %v271_v14  ;;  %v283_v18 = vand.u32 2147483648, %v271_v14  ;;  %v281_v20 = vand.u32 2147483647, %v271_v14  ;;  %vm277_vm15 = vweird.f32 %v271_v14 }
 0x54f   :  { %761 = vtanh.f32 %v266_v11 }
 0x550   :  { %v284_v22 = vor.u32 1.1754944e-38, %v283_v18  ;;  %vm282_vm3 = vcmp.eq.f32.partialorder %v281_v20, 8.507059e+37 }
 0x554   :  { %v760_v15 = vpop.eup %759 }
 0x555   :  { %v273_v16 = vmul.f32 %v760_v15, %v271_v14  ;;  %vm278_vm14 = vweird.f32 %v760_v15  ;;  %v762_v25 = vpop.eup %761 }
 0x556   :  { %vm279_vm2 = vmor %vm277_vm15, %vm278_vm14 }
 0x557   :  { %v274_v17 = vsub.f32 1.0, %v273_v16 }
 0x559   :  { %v275_v19 = vmul.f32 %v760_v15, %v274_v17 }
 0x55b   :  { %v276_v21 = vadd.f32 %v760_v15, %v275_v19 }
 0x55d   :  { %v280_v23 = vsel %vm279_vm2, %v760_v15, %v276_v21 }
 0x55e   :  { %v285_v26 = vsel %vm282_vm3, %v284_v22, %v280_v23 }
 0x55f   :  { %v287_v27 = vsel %vm914_vm5, %v762_v25, %v285_v26 }
 0x560   :  { %293 = vrot.lane.b32.xlu0 %v287_v27, %s834_s3  ;;  %v291_v31 = vmul.f32 %v289_v30, %v287_v27 }
 0x5d2   :  { %v294_v28 = vpop.permute.xlu0 %293 }
 0x5d3   :  { %v296_v29 = vmul.f32 %v294_v28, %v287_v27 }
 0x5d5   :  { %298 = vrot.lane.b32.xlu1 %v296_v29, %s835_s25 }
 0x647   :  { %v299_v32 = vpop.permute.xlu1 %298 }
 0x648   :  { %v301_v33 = vadd.f32 %v299_v32, %v291_v31 }
 0x64a   :  { %763 = vtanh.f32 %v301_v33  ;;  %v366_v58 = vrot.slane %v301_v33, 6 }
 0x650   :  { %v764_v34 = vpop.eup %763 }
 0x651   :  { %304 = vrot.lane.b32.xlu2 %v764_v34, %s834_s3 }
 0x6ab   :  { %v305_v35 = vpop.permute.xlu2 %304 }
 0x6ac   :  { %v950_v36 = vmul.f32 %v305_v35, %v287_v27 }
 0x6ae   :  { %v315_v37 = vrot.slane %v950_v36, 4 }
 0x6b0   :  { %316 = vrot.lane.b32.xlu0 %v315_v37, %s835_s25 }
 0x722   :  { %v317_v38 = vpop.permute.xlu0 %316 }
 0x723   :  { %719 = vmatmul.msk.f32.vlgmr.msrb.gmra.mxu1 %vm91_vm1, %v317_v38 }
 0x7a0   :  { %v337_v39 = vpop.f32.mrf.mxu1 }
 0x7a1   :  { %v341_v40 = vrot.slane %v337_v39, 2 }
 0x7a3   :  { %v343_v41 = vadd.f32 %v341_v40, %v911_v10 }
 0x7a5   :  { %v720_v42 = vmul.f32 -1.442695, %v343_v41 }
 0x7a7   :  { %765 = vpow2.f32 %v720_v42 }
 0x7ad   :  { %v766_v43 = vpop.eup %765 }
 0x7ae   :  { %v348_v44 = vadd.f32 1.0, %v766_v43 }
 0x7b0   :  { %767 = vrcp.f32 %v348_v44  ;;  %v360_v48 = vand.u32 2147483648, %v348_v44  ;;  %v358_v50 = vand.u32 2147483647, %v348_v44  ;;  %vm354_vm6 = vweird.f32 %v348_v44 }
 0x7b1   :  { %769 = vtanh.f32 %v343_v41 }
 0x7b2   :  { %v361_v52 = vor.u32 1.1754944e-38, %v360_v48  ;;  %vm359_vm8 = vcmp.eq.f32.partialorder %v358_v50, 8.507059e+37 }
 0x7b6   :  { %v768_v45 = vpop.eup %767 }
 0x7b7   :  { %v350_v46 = vmul.f32 %v768_v45, %v348_v44  ;;  %vm355_vm4 = vweird.f32 %v768_v45  ;;  %v770_v10 = vpop.eup %769 }
 0x7b8   :  { %vm356_vm7 = vmor %vm354_vm6, %vm355_vm4 }
 0x7b9   :  { %v351_v47 = vsub.f32 1.0, %v350_v46 }
 0x7bb   :  { %v352_v49 = vmul.f32 %v768_v45, %v351_v47 }
 0x7bd   :  { %v353_v51 = vadd.f32 %v768_v45, %v352_v49 }
 0x7bf   :  { %v357_v53 = vsel %vm356_vm7, %v768_v45, %v353_v51 }
 0x7c0   :  { %v362_v54 = vsel %vm359_vm8, %v361_v52, %v357_v53 }
 0x7c1   :  { %v364_v55 = vsel %vm914_vm5, %v770_v10, %v362_v54 }
 0x7c2   :  { %370 = vrot.lane.b32.xlu1 %v364_v55, %s834_s3  ;;  %v368_v59 = vmul.f32 %v366_v58, %v364_v55 }
 0x834   :  { %v371_v56 = vpop.permute.xlu1 %370 }
 0x835   :  { %v373_v57 = vmul.f32 %v371_v56, %v364_v55 }
 0x837   :  { %375 = vrot.lane.b32.xlu2 %v373_v57, %s835_s25 }
 0x891   :  { %v376_v60 = vpop.permute.xlu2 %375 }
 0x892   :  { %v378_v61 = vadd.f32 %v376_v60, %v368_v59 }
 0x894   :  { %771 = vtanh.f32 %v378_v61  ;;  %v440_v28 = vrot.slane %v378_v61, 6 }
 0x89a   :  { %v772_v62 = vpop.eup %771 }
 0x89b   :  { %381 = vrot.lane.b32.xlu0 %v772_v62, %s834_s3 }
 0x90d   :  { %v382_v63 = vpop.permute.xlu0 %381 }
 0x90e   :  { %v961_v0 = vmul.f32 %v382_v63, %v364_v55 }
 0x910   :  { %v392_v1 = vrot.slane %v961_v0, 6 }
 0x912   :  { %393 = vrot.lane.b32.xlu1 %v392_v1, %s835_s25 }
 0x984   :  { %v394_v3 = vpop.permute.xlu1 %393 }
 0x985   :  { %722 = vmatmul.msk.f32.vlgmr.msrb.gmra.mxu2 %vm91_vm1, %v394_v3 }
 0xa08   :  { %v414_v7 = vpop.f32.mrf.mxu2 }
 0xa09   :  { %v417_v9 = vadd.f32 %v414_v7, %v971_v6 }
 0xa0b   :  { %v723_v11 = vmul.f32 -1.442695, %v417_v9 }
 0xa0d   :  { %773 = vpow2.f32 %v723_v11 }
 0xa13   :  { %v774_v12 = vpop.eup %773 }
 0xa14   :  { %v422_v13 = vadd.f32 1.0, %v774_v12 }
 0xa16   :  { %775 = vrcp.f32 %v422_v13  ;;  %v434_v17 = vand.u32 2147483648, %v422_v13  ;;  %v432_v19 = vand.u32 2147483647, %v422_v13  ;;  %vm428_vm10 = vweird.f32 %v422_v13 }
 0xa17   :  { %777 = vtanh.f32 %v417_v9 }
 0xa18   :  { %v435_v8 = vor.u32 1.1754944e-38, %v434_v17  ;;  %vm433_vm12 = vcmp.eq.f32.partialorder %v432_v19, 8.507059e+37 }
 0xa1c   :  { %v776_v14 = vpop.eup %775 }
 0xa1d   :  { %v424_v15 = vmul.f32 %v776_v14, %v422_v13  ;;  %vm429_vm0 = vweird.f32 %v776_v14  ;;  %v778_v22 = vpop.eup %777 }
 0xa1e   :  { %vm430_vm11 = vmor %vm428_vm10, %vm429_vm0  ;;  %vm236_vm10 = vcmask 257026  }
 0xa1f   :  { %v425_v16 = vsub.f32 1.0, %v424_v15 }
 0xa21   :  { %v426_v18 = vmul.f32 %v776_v14, %v425_v16 }
 0xa23   :  { %v427_v20 = vadd.f32 %v776_v14, %v426_v18 }
 0xa25   :  { %v431_v21 = vsel %vm430_vm11, %v776_v14, %v427_v20  ;;  %vm390_vm11 = vcmask 261126  }
 0xa26   :  { %v436_v23 = vsel %vm433_vm12, %v435_v8, %v431_v21 }
 0xa27   :  { %v438_v25 = vsel %vm914_vm5, %v778_v22, %v436_v23 }
 0xa28   :  { %444 = vrot.lane.b32.xlu2 %v438_v25, %s834_s3  ;;  %v442_v29 = vmul.f32 %v440_v28, %v438_v25 }
 0xa82   :  { %v445_v26 = vpop.permute.xlu2 %444 }
 0xa83   :  { %v447_v27 = vmul.f32 %v445_v26, %v438_v25 }
 0xa85   :  { %449 = vrot.lane.b32.xlu0 %v447_v27, %s835_s25 }
 0xaf7   :  { %v450_v30 = vpop.permute.xlu0 %449 }
 0xaf8   :  { %v452_v31 = vadd.f32 %v450_v30, %v442_v29 }
 0xafa   :  { %779 = vtanh.f32 %v452_v31  ;;  %v513_v56 = vrot.slane %v452_v31, 6 }
 0xb00   :  { %v780_v32 = vpop.eup %779 }
 0xb01   :  { %455 = vrot.lane.b32.xlu1 %v780_v32, %s834_s3 }
 0xb73   :  { %v456_v33 = vpop.permute.xlu1 %455 }
 0xb74   :  { %v458_v34 = vmul.f32 %v456_v33, %v438_v25 }
 0xb76   :  { %460 = vrot.lane.b32.xlu2 %v458_v34, %s835_s25 }
 0xbd0   :  { %v461_v35 = vpop.permute.xlu2 %460 }
 0xbd1   :  { %724 = vst.msk [vmem:[%s1050_s6 + $0x8] sm:$0x3] %vm162_vm9, %v461_v35  ;;  %725 = vmatmul.msk.f32.vlgmr.msrb.gmra.mxu3 %vm91_vm1, %v461_v35 }
 0xc54   :  { %v484_v37 = vpop.f32.mrf.mxu3 }
 0xc55   :  { %v488_v38 = vrot.slane %v484_v37, 6 }
 0xc57   :  { %v490_v39 = vadd.f32 %v488_v38, %v971_v6 }
 0xc59   :  { %v726_v40 = vmul.f32 -1.442695, %v490_v39 }
 0xc5b   :  { %781 = vpow2.f32 %v726_v40 }
 0xc61   :  { %v782_v41 = vpop.eup %781 }
 0xc62   :  { %v495_v42 = vadd.f32 1.0, %v782_v41 }
 0xc64   :  { %783 = vrcp.f32 %v495_v42  ;;  %v507_v46 = vand.u32 2147483648, %v495_v42  ;;  %v505_v48 = vand.u32 2147483647, %v495_v42  ;;  %vm501_vm9 = vweird.f32 %v495_v42 }
 0xc65   :  { %785 = vtanh.f32 %v490_v39 }
 0xc66   :  { %v508_v50 = vor.u32 1.1754944e-38, %v507_v46  ;;  %vm506_vm15 = vcmp.eq.f32.partialorder %v505_v48, 8.507059e+37 }
 0xc6a   :  { %v784_v43 = vpop.eup %783 }
 0xc6b   :  { %v497_v44 = vmul.f32 %v784_v43, %v495_v42  ;;  %vm502_vm13 = vweird.f32 %v784_v43  ;;  %v786_v52 = vpop.eup %785 }
 0xc6c   :  { %vm503_vm14 = vmor %vm501_vm9, %vm502_vm13 }
 0xc6d   :  { %v498_v45 = vsub.f32 1.0, %v497_v44 }
 0xc6f   :  { %v499_v47 = vmul.f32 %v784_v43, %v498_v45 }
 0xc71   :  { %v500_v49 = vadd.f32 %v784_v43, %v499_v47 }
 0xc73   :  { %v504_v51 = vsel %vm503_vm14, %v784_v43, %v500_v49 }
 0xc74   :  { %v509_v53 = vsel %vm506_vm15, %v508_v50, %v504_v51 }
 0xc75   :  { %v511_v10 = vsel %vm914_vm5, %v786_v52, %v509_v53 }
 0xc76   :  { %517 = vrot.lane.b32.xlu0 %v511_v10, %s834_s3  ;;  %v515_v57 = vmul.f32 %v513_v56, %v511_v10 }
 0xce8   :  { %v518_v54 = vpop.permute.xlu0 %517 }
 0xce9   :  { %v520_v55 = vmul.f32 %v518_v54, %v511_v10 }
 0xceb   :  { %522 = vrot.lane.b32.xlu1 %v520_v55, %s835_s25 }
 0xd5d   :  { %v523_v58 = vpop.permute.xlu1 %522 }
 0xd5e   :  { %v525_v59 = vadd.f32 %v523_v58, %v515_v57 }
 0xd60   :  { %787 = vtanh.f32 %v525_v59  ;;  %v589_v26 = vrot.slane %v525_v59, 6 }
 0xd66   :  { %v788_v60 = vpop.eup %787 }
 0xd67   :  { %528 = vrot.lane.b32.xlu2 %v788_v60, %s834_s3 }
 0xdc1   :  { %v529_v61 = vpop.permute.xlu2 %528 }
 0xdc2   :  { %v991_v62 = vmul.f32 %v529_v61, %v511_v10 }
 0xdc4   :  { %v538_v63 = vrot.slane %v991_v62, 2 }
 0xdc6   :  { %539 = vrot.lane.b32.xlu0 %v538_v63, %s835_s25 }
 0xe38   :  { %v540_v1 = vpop.permute.xlu0 %539 }
 0xe39   :  { %728 = vmatmul.msk.f32.vlgmr.msrb.gmra.mxu0 %vm91_vm1, %v540_v1 }
 0xeb6   :  { %v560_v2 = vpop.f32.mrf.mxu0 }
 0xeb7   :  { %v564_v3 = vrot.slane %v560_v2, 4 }
 0xeb9   :  { %v566_v5 = vadd.f32 %v564_v3, %v971_v6 }
 0xebb   :  { %v729_v7 = vmul.f32 -1.442695, %v566_v5 }
 0xebd   :  { %789 = vpow2.f32 %v729_v7 }
 0xec3   :  { %v790_v9 = vpop.eup %789 }
 0xec4   :  { %v571_v11 = vadd.f32 1.0, %v790_v9 }
 0xec6   :  { %791 = vrcp.f32 %v571_v11  ;;  %v583_v15 = vand.u32 2147483648, %v571_v11  ;;  %v581_v17 = vand.u32 2147483647, %v571_v11  ;;  %vm577_vm3 = vweird.f32 %v571_v11 }
 0xec7   :  { %793 = vtanh.f32 %v566_v5 }
 0xec8   :  { %v584_v19 = vor.u32 1.1754944e-38, %v583_v15  ;;  %vm582_vm6 = vcmp.eq.f32.partialorder %v581_v17, 8.507059e+37 }
 0xecc   :  { %v792_v12 = vpop.eup %791 }
 0xecd   :  { %v573_v13 = vmul.f32 %v792_v12, %v571_v11  ;;  %vm578_vm2 = vweird.f32 %v792_v12  ;;  %v794_v8 = vpop.eup %793 }
 0xece   :  { %vm579_vm4 = vmor %vm577_vm3, %vm578_vm2 }
 0xecf   :  { %v574_v14 = vsub.f32 1.0, %v573_v13 }
 0xed1   :  { %v575_v16 = vmul.f32 %v792_v12, %v574_v14 }
 0xed3   :  { %v576_v18 = vadd.f32 %v792_v12, %v575_v16 }
 0xed5   :  { %v580_v20 = vsel %vm579_vm4, %v792_v12, %v576_v18 }
 0xed6   :  { %v585_v21 = vsel %vm582_vm6, %v584_v19, %v580_v20 }
 0xed7   :  { %v587_v22 = vsel %vm914_vm5, %v794_v8, %v585_v21 }
 0xed8   :  { %593 = vrot.lane.b32.xlu1 %v587_v22, %s834_s3  ;;  %v591_v27 = vmul.f32 %v589_v26, %v587_v22 }
 0xf4a   :  { %v594_v23 = vpop.permute.xlu1 %593 }
 0xf4b   :  { %v596_v25 = vmul.f32 %v594_v23, %v587_v22 }
 0xf4d   :  { %598 = vrot.lane.b32.xlu2 %v596_v25, %s835_s25 }
 0xfa7   :  { %v599_v28 = vpop.permute.xlu2 %598 }
 0xfa8   :  { %v601_v29 = vadd.f32 %v599_v28, %v591_v27 }
 0xfaa   :  { %795 = vtanh.f32 %v601_v29 }
 0xfb0   :  { %v796_v30 = vpop.eup %795 }
 0xfb1   :  { %604 = vrot.lane.b32.xlu0 %v796_v30, %s834_s3 }
0x1023   :  { %v605_v31 = vpop.permute.xlu0 %604 }
0x1024   :  { %v607_v32 = vmul.f32 %v605_v31, %v587_v22 }
0x1026   :  { %v614_v33 = vrot.slane %v607_v32, 4 }
0x1028   :  { %615 = vrot.lane.b32.xlu1 %v614_v33, %s835_s25 }
0x109a   :  { %v616_v34 = vpop.permute.xlu1 %615 }
0x109b   :  { %731 = vmatmul.msk.f32.vlgmr.msra.gmra.mxu1 %vm91_vm1, %v616_v34 }
0x1118   :  { %v636_v35 = vpop.f32.mrf.mxu1 }
0x1119   :  { %v640_v37 = vrot.slane %v636_v35, 2 }
0x111b   :  { %v642_v38 = vadd.f32 %v640_v37, %v971_v6 }
0x111d   :  { %v732_v39 = vmul.f32 -1.442695, %v642_v38 }
0x111f   :  { %797 = vpow2.f32 %v732_v39 }
0x1125   :  { %v798_v40 = vpop.eup %797 }
0x1126   :  { %v647_v41 = vadd.f32 1.0, %v798_v40 }
0x1128   :  { %799 = vrcp.f32 %v647_v41  ;;  %v659_v45 = vand.u32 2147483648, %v647_v41  ;;  %v657_v47 = vand.u32 2147483647, %v647_v41  ;;  %vm653_vm8 = vweird.f32 %v647_v41 }
0x1129   :  { %801 = vtanh.f32 %v642_v38 }
0x112a   :  { %v660_v49 = vor.u32 1.1754944e-38, %v659_v45  ;;  %vm658_vm0 = vcmp.eq.f32.partialorder %v657_v47, 8.507059e+37 }
0x112e   :  { %v800_v42 = vpop.eup %799 }
0x112f   :  { %v649_v43 = vmul.f32 %v800_v42, %v647_v41  ;;  %vm654_vm7 = vweird.f32 %v800_v42  ;;  %v802_v6 = vpop.eup %801 }
0x1130   :  { %vm655_vm1 = vmor %vm653_vm8, %vm654_vm7 }
0x1131   :  { %v650_v44 = vsub.f32 1.0, %v649_v43 }
0x1133   :  { %v651_v46 = vmul.f32 %v800_v42, %v650_v44 }
0x1135   :  { %v652_v48 = vadd.f32 %v800_v42, %v651_v46 }
0x1137   :  { %v656_v50 = vsel %vm655_vm1, %v800_v42, %v652_v48 }
0x1138   :  { %v661_v51 = vsel %vm658_vm0, %v660_v49, %v656_v50 }
0x1139   :  { %v663_v52 = vsel %vm914_vm5, %v802_v6, %v661_v51  ;;  %vm313_vm5 = vcmask 259076  }
0x113a   :  { %669 = vrot.lane.b32.xlu2 %v663_v52, %s834_s3 }
0x1142   :  { %232 = vrot.lane.b32.xlu2 %v939_v4, %s835_s25  ;;  %v665_v4 = vrot.slane %v601_v29, 6 }
0x1144   :  { %v667_v55 = vmul.f32 %v665_v4, %v663_v52 }
0x114a   :  { %533 = vrot.lane.b32.xlu2 %v991_v62, %s835_s25 }
0x1194   :  { %v670_v53 = vpop.permute.xlu2 %669 }
0x1195   :  { %v672_v10 = vmul.f32 %v670_v53, %v663_v52 }
0x1197   :  { %674 = vrot.lane.b32.xlu0 %v672_v10, %s835_s25 }
0x119c   :  { %v233_v54 = vpop.permute.xlu2 %232 }
0x119d   :  { %715 = vst.msk [vmem:[%s1050_s6] sm:$0xc] %vm236_vm10, %v233_v54 }
0x119f   :  { %309 = vrot.lane.b32.xlu0 %v950_v36, %s835_s25 }
0x11a4   :  { %v534_v24 = vpop.permute.xlu2 %533 }
0x11a5   :  { %727 = vst.msk [vmem:[%s1050_s6 + $0x8] sm:$0xc] %vm236_vm10, %v534_v24 }
0x11a7   :  { %609 = vrot.lane.b32.xlu0 %v607_v32, %s835_s25 }
0x1209   :  { %v675_v56 = vpop.permute.xlu0 %674 }
0x120a   :  { %v677_v57 = vadd.f32 %v675_v56, %v667_v55 }
0x120c   :  { %803 = vtanh.f32 %v677_v57  ;;  %692 = vrot.lane.b32.xlu2 %v677_v57, %s836_s12 }
0x1211   :  { %v310_v58 = vpop.permute.xlu0 %309 }
0x1212   :  { %v804_v59 = vpop.eup %803  ;;  %718 = vst.msk [vmem:[%s1050_s6] sm:$0x30] %vm313_vm5, %v310_v58 }
0x1213   :  { %680 = vrot.lane.b32.xlu1 %v804_v59, %s834_s3 }
0x1219   :  { %v610_v36 = vpop.permute.xlu0 %609 }
0x121a   :  { %730 = vst.msk [vmem:[%s1050_s6 + $0x8] sm:$0x30] %vm313_vm5, %v610_v36 }
0x121b   :  { %386 = vrot.lane.b32.xlu1 %v961_v0, %s835_s25 }
0x1266   :  { %v693_v60 = vpop.permute.xlu2 %692 }
0x1267   :  { %695 = vst.msk [vmem:[%s1052_s8 - $0x6] sm:$0xc0] %vm390_vm11, %v693_v60 }
0x1285   :  { %v681_v61 = vpop.permute.xlu1 %680 }
0x1286   :  { %v683_v62 = vmul.f32 %v681_v61, %v663_v52 }
0x1288   :  { %685 = vrot.lane.b32.xlu1 %v683_v62, %s835_s25 }
0x128d   :  { %v387_v63 = vpop.permute.xlu1 %386 }
0x128e   :  { %721 = vst.msk [vmem:[%s1050_s6] sm:$0xc0] %vm390_vm11, %v387_v63 }
0x12fa   :  { %v686_v1 = vpop.permute.xlu1 %685 }
0x12fb   :  { %733 = vst.msk [vmem:[%s1050_s6 + $0x8] sm:$0xc0] %vm390_vm11, %v686_v1 }
0x12fc   :  { %690 = vst.msk [vmem:[%s1051_s7 - $0x6] sm:$0xc0] %vm390_vm11, %v686_v1 }
0x12fd   :  { %708 = vsyncpa [#allocation3], 1 }

// kernel: rnn_forward.3
= control target key start
LH: loop header
LB: loop body
LE: loop exit
PB: predicated region body
PF: predicated region fallthrough
CT: control target
= control target key end

     0   :  { %16 = vsyncpa [#allocation3], 0  ;;  %s1070_s0 = inlined_call_operand.vmem [shape: f32[16,32], index: 0, kind: input, shape index: {}]   ;;  %s1071_s1 = inlined_call_operand.vmem [shape: f32[32,128], index: 1, kind: input, shape index: {}]   ;;  %s1072_s2 = inlined_call_operand.hbm [shape: f32[32,128], index: 2, kind: input, shape index: {}]   ;;  %s1073_s3 = inlined_call_operand.vmem [shape: f32[1,128], index: 3, kind: input, shape index: {}]   ;;  %s1074_s4 = inlined_call_operand.vmem [shape: f32[2,32], index: 4, kind: input, shape index: {}]   ;;  %s1075_s5 = inlined_call_operand.vmem [shape: f32[2,32], index: 5, kind: input, shape index: {}]   ;;  %s1076_s6 = inlined_call_operand.vmem [shape: f32[32,4], index: 6, kind: input, shape index: {}]   ;;  %s1077_s7 = inlined_call_operand.vmem [shape: f32[1,4], index: 7, kind: input, shape index: {}]   ;;  %s1078_s8 = inlined_call_operand.hbm [shape: f32[2,4], index: 8, kind: output, shape index: {0}]   ;;  %s1079_s9 = inlined_call_operand.vmem [shape: f32[2,32], index: 9, kind: output, shape index: {1}]   ;;  %s1080_s10 = inlined_call_operand.vmem [shape: f32[2,32], index: 10, kind: output, shape index: {2}]  }
   0x1   :  { %17 = vsyncpa [#allocation4], 0  ;;  %s26_s15 = sshll.u32 %s1072_s2, 4  ;;  %s873_s16 = smov [#allocation2]   ;;  %s27_s15 = int_to_ptr.hbm [resolvable:$true] %s26_s15 }
   0x2   :  { %s28_s17 = sshll.u32 %s873_s16, 4  ;;  %s874_s18 = smov 128   ;;  %s29_s17 = int_to_ptr.vmem [resolvable:$true] %s28_s17 }
   0x3   :  { %s875_s19 = smov 8  }
   0x4   :  { %34 = dma.hbm_to_vmem [thread:$0]  %s27_s15, 512, %s29_s17, [#allocation3], %s874_s18, %s874_s18, %s875_s19  }
   0x5   :  { %869 = dma.done.wait [#allocation3], 512  }
   0x6   :  { %870 = vsyncadd [#allocation3], 4294966784  ;;  %v54_v0 = vld [vmem:[%s1071_s1 + $0x18] sm:$0xff]  ;;  %v53_v1 = vld [vmem:[%s1071_s1 + $0x10] sm:$0xff]  ;;  %vm59_vm0 = vcmask 261120   ;;  %v93_v18 = vlaneseq  ;;  %s877_s13 = smov 32  }
   0x7   :  { %v92_v2 = vld [vmem:[#allocation2 + $0x18] sm:$0xff]  ;;  %78 = vmatpush.msra.mxu0 %v54_v0  ;;  %v91_v3 = vld [vmem:[#allocation2 + $0x10] sm:$0xff]  ;;  %v52_v4 = vld [vmem:[%s1071_s1 + $0x8] sm:$0xff]  ;;  %s879_s27 = smov [#allocation5]  }
   0x8   :  { %115 = vmatpush.msra.mxu1 %v92_v2  ;;  %v90_v5 = vld [vmem:[#allocation2 + $0x8] sm:$0xff]  ;;  %183 = vmatpush.msra.mxu2 %v92_v2  ;;  %v51_v6 = vld [vmem:[%s1071_s1] sm:$0xff]  ;;  %v94_v20 = vand.u32 127, %v93_v18  ;;  %v672_v26 = vld [vmem:[%s1076_s6 + $0x18] sm:$0xff]  ;;  %s709_s28 = sshll.u32 %s879_s27, 4  ;;  %s711_s1 = sshll.u32 %s1078_s8, 4  ;;  %s710_s28 = int_to_ptr.vmem [resolvable:$true] %s709_s28  ;;  %s712_s1 = int_to_ptr.hbm [resolvable:$true] %s711_s1 }
   0x9   :  { %254 = vmatpush.msra.mxu3 %v92_v2  ;;  %79 = vmatpush.msra.mxu0 %v53_v1  ;;  %v89_v7 = vld [vmem:[#allocation2] sm:$0xff] }
   0xa   :  { %116 = vmatpush.msra.mxu1 %v91_v3  ;;  %184 = vmatpush.msra.mxu2 %v91_v3  ;;  %v49_v8 = vld [vmem:[%s1070_s0] sm:$0xff]  ;;  %vm95_vm1 = vcmp.ge.s32.totalorder %v94_v20, 64  ;;  %vm96_vm2 = vcmp.lt.s32.totalorder %v94_v20, 96 }
   0xb   :  { %255 = vmatpush.msra.mxu3 %v91_v3  ;;  %80 = vmatpush.msra.mxu0 %v52_v4  ;;  %v98_v9 = vld [vmem:[%s1074_s4] sm:$0x3]  ;;  %vm967_vm4 = vmand %vm95_vm1, %vm96_vm2 }
   0xc   :  { %117 = vmatpush.msra.mxu1 %v90_v5  ;;  %185 = vmatpush.msra.mxu2 %v90_v5  ;;  %v961_v10 = vld [vmem:[%s1073_s3] ss:$0 sm:$0xff]  ;;  %s876_s3 = smov 64  }
   0xd   :  { %256 = vmatpush.msra.mxu3 %v90_v5  ;;  %81 = vmatpush.msra.mxu0 %v51_v6  ;;  %v99_v33 = vld [vmem:[%s1075_s5] sm:$0x3] }
   0xe   :  { %118 = vmatpush.msra.mxu1 %v89_v7  ;;  %729 = vmatmul.msk.f32.vlgmr.msra.gmra.mxu0 %vm59_vm0, %v49_v8 }
   0xf   :  { %731 = vmatmul.msk.f32.vlgmr.msra.gmra.mxu1 %vm59_vm0, %v98_v9  ;;  %186 = vmatpush.msra.mxu2 %v89_v7 }
  0x10   :  { %257 = vmatpush.msra.mxu3 %v89_v7  ;;  %325 = vmatpush.msrb.mxu1 %v92_v2 }
  0x11   :  { %396 = vmatpush.msrb.mxu2 %v92_v2  ;;  %534 = vmatpush.msrb.mxu0 %v92_v2 }
  0x12   :  { %463 = vmatpush.msrb.mxu3 %v92_v2  ;;  %326 = vmatpush.msrb.mxu1 %v91_v3 }
  0x13   :  { %397 = vmatpush.msrb.mxu2 %v91_v3  ;;  %535 = vmatpush.msrb.mxu0 %v91_v3 }
  0x14   :  { %464 = vmatpush.msrb.mxu3 %v91_v3  ;;  %327 = vmatpush.msrb.mxu1 %v90_v5 }
  0x15   :  { %398 = vmatpush.msrb.mxu2 %v90_v5  ;;  %536 = vmatpush.msrb.mxu0 %v90_v5 }
  0x16   :  { %465 = vmatpush.msrb.mxu3 %v90_v5  ;;  %328 = vmatpush.msrb.mxu1 %v89_v7 }
  0x17   :  { %399 = vmatpush.msrb.mxu2 %v89_v7  ;;  %537 = vmatpush.msrb.mxu0 %v89_v7 }
  0x18   :  { %466 = vmatpush.msrb.mxu3 %v89_v7  ;;  %605 = vmatpush.msra.mxu1 %v92_v2 }
  0x1a   :  { %606 = vmatpush.msra.mxu1 %v91_v3 }
  0x1c   :  { %607 = vmatpush.msra.mxu1 %v90_v5 }
  0x1e   :  { %608 = vmatpush.msra.mxu1 %v89_v7 }
  0x8b   :  { %v83_v11 = vpop.f32.mrf.mxu0 }
  0x8c   :  { %v120_v12 = vpop.f32.mrf.mxu1  ;;  %v964_v13 = vadd.f32 %v961_v10, %v83_v11 }
  0x8e   :  { %v123_v14 = vadd.f32 %v120_v12, %v964_v13 }
  0x90   :  { %v732_v15 = vmul.f32 -1.442695, %v123_v14 }
  0x92   :  { %757 = vpow2.f32 %v732_v15 }
  0x98   :  { %v758_v16 = vpop.eup %757 }
  0x99   :  { %v128_v17 = vadd.f32 1.0, %v758_v16 }
  0x9b   :  { %759 = vrcp.f32 %v128_v17  ;;  %v140_v23 = vand.u32 2147483648, %v128_v17  ;;  %v138_v25 = vand.u32 2147483647, %v128_v17  ;;  %vm134_vm5 = vweird.f32 %v128_v17 }
  0x9c   :  { %761 = vtanh.f32 %v123_v14 }
  0x9d   :  { %v141_v28 = vor.u32 1.1754944e-38, %v140_v23  ;;  %vm139_vm7 = vcmp.eq.f32.partialorder %v138_v25, 8.507059e+37 }
  0xa1   :  { %v760_v19 = vpop.eup %759 }
  0xa2   :  { %v130_v21 = vmul.f32 %v760_v19, %v128_v17  ;;  %vm135_vm3 = vweird.f32 %v760_v19  ;;  %v762_v30 = vpop.eup %761 }
  0xa3   :  { %vm136_vm6 = vmor %vm134_vm5, %vm135_vm3 }
  0xa4   :  { %v131_v22 = vsub.f32 1.0, %v130_v21 }
  0xa6   :  { %v132_v24 = vmul.f32 %v760_v19, %v131_v22 }
  0xa8   :  { %v133_v27 = vadd.f32 %v760_v19, %v132_v24 }
  0xaa   :  { %v137_v29 = vsel %vm136_vm6, %v760_v19, %v133_v27 }
  0xab   :  { %v142_v31 = vsel %vm139_vm7, %v141_v28, %v137_v29 }
  0xac   :  { %v144_v32 = vsel %vm967_vm4, %v762_v30, %v142_v31 }
  0xad   :  { %151 = vrot.lane.b32.xlu0 %v144_v32, %s876_s3 }
  0xb5   :  { %146 = vrot.lane.b32.xlu0 %v99_v33, %s877_s13 }
 0x11f   :  { %v152_v34 = vpop.permute.xlu0 %151 }
 0x120   :  { %v154_v35 = vmul.f32 %v152_v34, %v144_v32 }
 0x122   :  { %156 = vrot.lane.b32.xlu1 %v154_v35, %s877_s13 }
 0x127   :  { %v147_v36 = vpop.permute.xlu0 %146 }
 0x128   :  { %v149_v37 = vmul.f32 %v147_v36, %v144_v32 }
 0x194   :  { %v157_v38 = vpop.permute.xlu1 %156 }
 0x195   :  { %v159_v39 = vadd.f32 %v157_v38, %v149_v37 }
 0x197   :  { %763 = vtanh.f32 %v159_v39  ;;  %v217_v0 = vrot.slane %v159_v39, 6 }
 0x19d   :  { %v764_v40 = vpop.eup %763 }
 0x19e   :  { %162 = vrot.lane.b32.xlu1 %v764_v40, %s876_s3 }
 0x210   :  { %v163_v41 = vpop.permute.xlu1 %162 }
 0x211   :  { %v165_v42 = vmul.f32 %v163_v41, %v144_v32 }
 0x213   :  { %167 = vrot.lane.b32.xlu2 %v165_v42, %s877_s13 }
 0x26d   :  { %v168_v43 = vpop.permute.xlu2 %167 }
 0x26e   :  { %733 = vmatmul.msk.f32.vlgmr.msra.gmra.mxu2 %vm59_vm0, %v168_v43 }
 0x26f   :  { %694 = vmatpush.msra.mxu2 %v672_v26 }
 0x2f1   :  { %v188_v44 = vpop.f32.mrf.mxu2 }
 0x2f2   :  { %v192_v45 = vrot.slane %v188_v44, 6 }
 0x2f4   :  { %v194_v46 = vadd.f32 %v192_v45, %v964_v13 }
 0x2f6   :  { %v734_v47 = vmul.f32 -1.442695, %v194_v46 }
 0x2f8   :  { %765 = vpow2.f32 %v734_v47 }
 0x2fe   :  { %v766_v48 = vpop.eup %765 }
 0x2ff   :  { %v199_v49 = vadd.f32 1.0, %v766_v48 }
 0x301   :  { %767 = vrcp.f32 %v199_v49  ;;  %v211_v53 = vand.u32 2147483648, %v199_v49  ;;  %v209_v55 = vand.u32 2147483647, %v199_v49  ;;  %vm205_vm9 = vweird.f32 %v199_v49 }
 0x302   :  { %769 = vtanh.f32 %v194_v46 }
 0x303   :  { %v212_v57 = vor.u32 1.1754944e-38, %v211_v53  ;;  %vm210_vm11 = vcmp.eq.f32.partialorder %v209_v55, 8.507059e+37 }
 0x307   :  { %v768_v50 = vpop.eup %767 }
 0x308   :  { %v201_v51 = vmul.f32 %v768_v50, %v199_v49  ;;  %vm206_vm8 = vweird.f32 %v768_v50  ;;  %v770_v59 = vpop.eup %769 }
 0x309   :  { %vm207_vm10 = vmor %vm205_vm9, %vm206_vm8 }
 0x30a   :  { %v202_v52 = vsub.f32 1.0, %v201_v51 }
 0x30c   :  { %v203_v54 = vmul.f32 %v768_v50, %v202_v52 }
 0x30e   :  { %v204_v56 = vadd.f32 %v768_v50, %v203_v54 }
 0x310   :  { %v208_v58 = vsel %vm207_vm10, %v768_v50, %v204_v56 }
 0x311   :  { %v213_v60 = vsel %vm210_vm11, %v212_v57, %v208_v58 }
 0x312   :  { %v215_v61 = vsel %vm967_vm4, %v770_v59, %v213_v60 }
 0x313   :  { %221 = vrot.lane.b32.xlu2 %v215_v61, %s876_s3  ;;  %v219_v1 = vmul.f32 %v217_v0, %v215_v61 }
 0x36d   :  { %v222_v62 = vpop.permute.xlu2 %221 }
 0x36e   :  { %v224_v63 = vmul.f32 %v222_v62, %v215_v61 }
 0x370   :  { %226 = vrot.lane.b32.xlu0 %v224_v63, %s877_s13 }
 0x3e2   :  { %v227_v2 = vpop.permute.xlu0 %226 }
 0x3e3   :  { %v229_v3 = vadd.f32 %v227_v2, %v219_v1 }
 0x3e5   :  { %771 = vtanh.f32 %v229_v3  ;;  %v288_v32 = vrot.slane %v229_v3, 6 }
 0x3eb   :  { %v772_v4 = vpop.eup %771 }
 0x3ec   :  { %232 = vrot.lane.b32.xlu1 %v772_v4, %s876_s3  ;;  %v50_v4 = vld [vmem:[%s1070_s0 + $0x8] sm:$0xff]  ;;  %s878_s0 = smov 96  }
 0x3ed   :  { %730 = vmatmul.msk.f32.gmra.mxu0 %vm59_vm0, %v50_v4 }
 0x45e   :  { %v233_v5 = vpop.permute.xlu1 %232 }
 0x45f   :  { %v235_v6 = vmul.f32 %v233_v5, %v215_v61 }
 0x461   :  { %v237_v7 = vrot.slane %v235_v6, 2 }
 0x463   :  { %238 = vrot.lane.b32.xlu2 %v237_v7, %s877_s13 }
 0x46a   :  { %v86_v6 = vpop.f32.mrf.mxu0 }
 0x46b   :  { %v1011_v7 = vadd.f32 %v961_v10, %v86_v6 }
 0x4bd   :  { %v239_v8 = vpop.permute.xlu2 %238 }
 0x4be   :  { %735 = vmatmul.msk.f32.vlgmr.msra.gmra.mxu3 %vm59_vm0, %v239_v8 }
 0x541   :  { %v259_v9 = vpop.f32.mrf.mxu3 }
 0x542   :  { %v263_v11 = vrot.slane %v259_v9, 4 }
 0x544   :  { %v265_v12 = vadd.f32 %v263_v11, %v964_v13 }
 0x546   :  { %v736_v14 = vmul.f32 -1.442695, %v265_v12 }
 0x548   :  { %773 = vpow2.f32 %v736_v14 }
 0x54e   :  { %v774_v15 = vpop.eup %773 }
 0x54f   :  { %v270_v16 = vadd.f32 1.0, %v774_v15 }
 0x551   :  { %775 = vrcp.f32 %v270_v16  ;;  %v282_v20 = vand.u32 2147483648, %v270_v16  ;;  %v280_v22 = vand.u32 2147483647, %v270_v16  ;;  %vm276_vm13 = vweird.f32 %v270_v16 }
 0x552   :  { %777 = vtanh.f32 %v265_v12 }
 0x553   :  { %v283_v24 = vor.u32 1.1754944e-38, %v282_v20  ;;  %vm281_vm15 = vcmp.eq.f32.partialorder %v280_v22, 8.507059e+37 }
 0x557   :  { %v776_v17 = vpop.eup %775 }
 0x558   :  { %v272_v18 = vmul.f32 %v776_v17, %v270_v16  ;;  %vm277_vm12 = vweird.f32 %v776_v17  ;;  %v778_v27 = vpop.eup %777 }
 0x559   :  { %vm278_vm14 = vmor %vm276_vm13, %vm277_vm12 }
 0x55a   :  { %v273_v19 = vsub.f32 1.0, %v272_v18 }
 0x55c   :  { %v274_v21 = vmul.f32 %v776_v17, %v273_v19 }
 0x55e   :  { %v275_v23 = vadd.f32 %v776_v17, %v274_v21 }
 0x560   :  { %v279_v25 = vsel %vm278_vm14, %v776_v17, %v275_v23 }
 0x561   :  { %v284_v28 = vsel %vm281_vm15, %v283_v24, %v279_v25 }
 0x562   :  { %v286_v29 = vsel %vm967_vm4, %v778_v27, %v284_v28 }
 0x563   :  { %292 = vrot.lane.b32.xlu0 %v286_v29, %s876_s3  ;;  %v290_v33 = vmul.f32 %v288_v32, %v286_v29 }
 0x5d5   :  { %v293_v30 = vpop.permute.xlu0 %292 }
 0x5d6   :  { %v295_v31 = vmul.f32 %v293_v30, %v286_v29 }
 0x5d8   :  { %297 = vrot.lane.b32.xlu1 %v295_v31, %s877_s13 }
 0x64a   :  { %v298_v34 = vpop.permute.xlu1 %297 }
 0x64b   :  { %v300_v35 = vadd.f32 %v298_v34, %v290_v33 }
 0x64d   :  { %779 = vtanh.f32 %v300_v35  ;;  %v359_v60 = vrot.slane %v300_v35, 6 }
 0x653   :  { %v780_v36 = vpop.eup %779 }
 0x654   :  { %303 = vrot.lane.b32.xlu2 %v780_v36, %s876_s3 }
 0x6ae   :  { %v304_v37 = vpop.permute.xlu2 %303 }
 0x6af   :  { %v306_v38 = vmul.f32 %v304_v37, %v286_v29 }
 0x6b1   :  { %v308_v39 = vrot.slane %v306_v38, 4 }
 0x6b3   :  { %309 = vrot.lane.b32.xlu0 %v308_v39, %s877_s13 }
 0x725   :  { %v310_v40 = vpop.permute.xlu0 %309 }
 0x726   :  { %737 = vmatmul.msk.f32.vlgmr.msrb.gmra.mxu1 %vm59_vm0, %v310_v40 }
 0x7a3   :  { %v330_v41 = vpop.f32.mrf.mxu1 }
 0x7a4   :  { %v334_v42 = vrot.slane %v330_v41, 2 }
 0x7a6   :  { %v336_v43 = vadd.f32 %v334_v42, %v964_v13 }
 0x7a8   :  { %v738_v44 = vmul.f32 -1.442695, %v336_v43 }
 0x7aa   :  { %781 = vpow2.f32 %v738_v44 }
 0x7b0   :  { %v782_v45 = vpop.eup %781 }
 0x7b1   :  { %v341_v46 = vadd.f32 1.0, %v782_v45 }
 0x7b3   :  { %783 = vrcp.f32 %v341_v46  ;;  %v353_v50 = vand.u32 2147483648, %v341_v46  ;;  %v351_v52 = vand.u32 2147483647, %v341_v46  ;;  %vm347_vm2 = vweird.f32 %v341_v46 }
 0x7b4   :  { %785 = vtanh.f32 %v336_v43 }
 0x7b5   :  { %v354_v54 = vor.u32 1.1754944e-38, %v353_v50  ;;  %vm352_vm5 = vcmp.eq.f32.partialorder %v351_v52, 8.507059e+37 }
 0x7b9   :  { %v784_v47 = vpop.eup %783 }
 0x7ba   :  { %v343_v48 = vmul.f32 %v784_v47, %v341_v46  ;;  %vm348_vm1 = vweird.f32 %v784_v47  ;;  %v786_v13 = vpop.eup %785 }
 0x7bb   :  { %vm349_vm3 = vmor %vm347_vm2, %vm348_vm1 }
 0x7bc   :  { %v344_v49 = vsub.f32 1.0, %v343_v48 }
 0x7be   :  { %v345_v51 = vmul.f32 %v784_v47, %v344_v49 }
 0x7c0   :  { %v346_v53 = vadd.f32 %v784_v47, %v345_v51 }
 0x7c2   :  { %v350_v55 = vsel %vm349_vm3, %v784_v47, %v346_v53 }
 0x7c3   :  { %v355_v56 = vsel %vm352_vm5, %v354_v54, %v350_v55 }
 0x7c4   :  { %v357_v57 = vsel %vm967_vm4, %v786_v13, %v355_v56 }
 0x7c5   :  { %363 = vrot.lane.b32.xlu1 %v357_v57, %s876_s3  ;;  %v361_v61 = vmul.f32 %v359_v60, %v357_v57 }
 0x837   :  { %v364_v58 = vpop.permute.xlu1 %363 }
 0x838   :  { %v366_v59 = vmul.f32 %v364_v58, %v357_v57 }
 0x83a   :  { %368 = vrot.lane.b32.xlu2 %v366_v59, %s877_s13 }
 0x894   :  { %v369_v62 = vpop.permute.xlu2 %368 }
 0x895   :  { %v371_v63 = vadd.f32 %v369_v62, %v361_v61 }
 0x897   :  { %787 = vtanh.f32 %v371_v63  ;;  %v427_v29 = vrot.slane %v371_v63, 6 }
 0x89d   :  { %v788_v0 = vpop.eup %787 }
 0x89e   :  { %374 = vrot.lane.b32.xlu0 %v788_v0, %s876_s3 }
 0x910   :  { %v375_v1 = vpop.permute.xlu0 %374 }
 0x911   :  { %v377_v2 = vmul.f32 %v375_v1, %v357_v57 }
 0x913   :  { %v379_v3 = vrot.slane %v377_v2, 6 }
 0x915   :  { %380 = vrot.lane.b32.xlu1 %v379_v3, %s877_s13 }
 0x987   :  { %v381_v5 = vpop.permute.xlu1 %380 }
 0x988   :  { %739 = vmatmul.msk.f32.vlgmr.msrb.gmra.mxu2 %vm59_vm0, %v381_v5 }
 0xa0b   :  { %v401_v8 = vpop.f32.mrf.mxu2 }
 0xa0c   :  { %v404_v9 = vadd.f32 %v401_v8, %v1011_v7 }
 0xa0e   :  { %v740_v11 = vmul.f32 -1.442695, %v404_v9 }
 0xa10   :  { %789 = vpow2.f32 %v740_v11 }
 0xa16   :  { %v790_v12 = vpop.eup %789 }
 0xa17   :  { %v409_v14 = vadd.f32 1.0, %v790_v12 }
 0xa19   :  { %791 = vrcp.f32 %v409_v14  ;;  %v421_v18 = vand.u32 2147483648, %v409_v14  ;;  %v419_v20 = vand.u32 2147483647, %v409_v14  ;;  %vm415_vm7 = vweird.f32 %v409_v14 }
 0xa1a   :  { %793 = vtanh.f32 %v404_v9 }
 0xa1b   :  { %v422_v10 = vor.u32 1.1754944e-38, %v421_v18  ;;  %vm420_vm9 = vcmp.eq.f32.partialorder %v419_v20, 8.507059e+37 }
 0xa1f   :  { %v792_v15 = vpop.eup %791 }
 0xa20   :  { %v411_v16 = vmul.f32 %v792_v15, %v409_v14  ;;  %vm416_vm6 = vweird.f32 %v792_v15  ;;  %v794_v23 = vpop.eup %793 }
 0xa21   :  { %vm417_vm8 = vmor %vm415_vm7, %vm416_vm6 }
 0xa22   :  { %v412_v17 = vsub.f32 1.0, %v411_v16 }
 0xa24   :  { %v413_v19 = vmul.f32 %v792_v15, %v412_v17 }
 0xa26   :  { %v414_v21 = vadd.f32 %v792_v15, %v413_v19 }
 0xa28   :  { %v418_v22 = vsel %vm417_vm8, %v792_v15, %v414_v21  ;;  %vm702_vm8 = vcmask 25600  }
 0xa29   :  { %v423_v24 = vsel %vm420_vm9, %v422_v10, %v418_v22 }
 0xa2a   :  { %v425_v25 = vsel %vm967_vm4, %v794_v23, %v423_v24 }
 0xa2b   :  { %431 = vrot.lane.b32.xlu2 %v425_v25, %s876_s3  ;;  %v429_v30 = vmul.f32 %v427_v29, %v425_v25 }
 0xa85   :  { %v432_v27 = vpop.permute.xlu2 %431 }
 0xa86   :  { %v434_v28 = vmul.f32 %v432_v27, %v425_v25 }
 0xa88   :  { %436 = vrot.lane.b32.xlu0 %v434_v28, %s877_s13 }
 0xafa   :  { %v437_v31 = vpop.permute.xlu0 %436 }
 0xafb   :  { %v439_v32 = vadd.f32 %v437_v31, %v429_v30 }
 0xafd   :  { %795 = vtanh.f32 %v439_v32  ;;  %v497_v56 = vrot.slane %v439_v32, 6 }
 0xb03   :  { %v796_v33 = vpop.eup %795 }
 0xb04   :  { %442 = vrot.lane.b32.xlu1 %v796_v33, %s876_s3 }
 0xb76   :  { %v443_v34 = vpop.permute.xlu1 %442 }
 0xb77   :  { %v445_v35 = vmul.f32 %v443_v34, %v425_v25 }
 0xb79   :  { %447 = vrot.lane.b32.xlu2 %v445_v35, %s877_s13 }
 0xbd3   :  { %v448_v36 = vpop.permute.xlu2 %447 }
 0xbd4   :  { %741 = vmatmul.msk.f32.vlgmr.msrb.gmra.mxu3 %vm59_vm0, %v448_v36 }
 0xc57   :  { %v468_v37 = vpop.f32.mrf.mxu3 }
 0xc58   :  { %v472_v38 = vrot.slane %v468_v37, 6 }
 0xc5a   :  { %v474_v39 = vadd.f32 %v472_v38, %v1011_v7 }
 0xc5c   :  { %v742_v40 = vmul.f32 -1.442695, %v474_v39 }
 0xc5e   :  { %797 = vpow2.f32 %v742_v40 }
 0xc64   :  { %v798_v41 = vpop.eup %797 }
 0xc65   :  { %v479_v42 = vadd.f32 1.0, %v798_v41 }
 0xc67   :  { %799 = vrcp.f32 %v479_v42  ;;  %v491_v46 = vand.u32 2147483648, %v479_v42  ;;  %v489_v48 = vand.u32 2147483647, %v479_v42  ;;  %vm485_vm11 = vweird.f32 %v479_v42 }
 0xc68   :  { %801 = vtanh.f32 %v474_v39 }
 0xc69   :  { %v492_v50 = vor.u32 1.1754944e-38, %v491_v46  ;;  %vm490_vm13 = vcmp.eq.f32.partialorder %v489_v48, 8.507059e+37 }
 0xc6d   :  { %v800_v43 = vpop.eup %799 }
 0xc6e   :  { %v481_v44 = vmul.f32 %v800_v43, %v479_v42  ;;  %vm486_vm10 = vweird.f32 %v800_v43  ;;  %v802_v52 = vpop.eup %801 }
 0xc6f   :  { %vm487_vm12 = vmor %vm485_vm11, %vm486_vm10 }
 0xc70   :  { %v482_v45 = vsub.f32 1.0, %v481_v44 }
 0xc72   :  { %v483_v47 = vmul.f32 %v800_v43, %v482_v45 }
 0xc74   :  { %v484_v49 = vadd.f32 %v800_v43, %v483_v47 }
 0xc76   :  { %v488_v51 = vsel %vm487_vm12, %v800_v43, %v484_v49 }
 0xc77   :  { %v493_v53 = vsel %vm490_vm13, %v492_v50, %v488_v51 }
 0xc78   :  { %v495_v54 = vsel %vm967_vm4, %v802_v52, %v493_v53 }
 0xc79   :  { %501 = vrot.lane.b32.xlu0 %v495_v54, %s876_s3  ;;  %v499_v57 = vmul.f32 %v497_v56, %v495_v54  ;;  %v671_v56 = vld [vmem:[%s1076_s6 + $0x10] sm:$0xff] }
 0xc7a   :  { %695 = vmatpush.msra.mxu2 %v671_v56 }
 0xceb   :  { %v502_v55 = vpop.permute.xlu0 %501 }
 0xcec   :  { %v504_v13 = vmul.f32 %v502_v55, %v495_v54 }
 0xcee   :  { %506 = vrot.lane.b32.xlu1 %v504_v13, %s877_s13 }
 0xd60   :  { %v507_v58 = vpop.permute.xlu1 %506 }
 0xd61   :  { %v509_v59 = vadd.f32 %v507_v58, %v499_v57  ;;  %v670_v57 = vld [vmem:[%s1076_s6 + $0x8] sm:$0xff]  ;;  %v669_v58 = vld [vmem:[%s1076_s6] sm:$0xff] }
 0xd62   :  { %696 = vmatpush.msra.mxu2 %v670_v57 }
 0xd63   :  { %803 = vtanh.f32 %v509_v59  ;;  %v568_v23 = vrot.slane %v509_v59, 6 }
 0xd64   :  { %697 = vmatpush.msra.mxu2 %v669_v58 }
 0xd69   :  { %v804_v60 = vpop.eup %803 }
 0xd6a   :  { %512 = vrot.lane.b32.xlu2 %v804_v60, %s876_s3 }
 0xdc4   :  { %v513_v61 = vpop.permute.xlu2 %512 }
 0xdc5   :  { %v515_v62 = vmul.f32 %v513_v61, %v495_v54 }
 0xdc7   :  { %v517_v63 = vrot.slane %v515_v62, 2 }
 0xdc9   :  { %518 = vrot.lane.b32.xlu0 %v517_v63, %s877_s13 }
 0xe3b   :  { %v519_v0 = vpop.permute.xlu0 %518 }
 0xe3c   :  { %743 = vmatmul.msk.f32.vlgmr.msrb.gmra.mxu0 %vm59_vm0, %v519_v0 }
 0xeb9   :  { %v539_v1 = vpop.f32.mrf.mxu0 }
 0xeba   :  { %v543_v2 = vrot.slane %v539_v1, 4  ;;  %v756_v1 = vld [vmem:[%s1077_s7] ss:$0 sm:$0xff] }
 0xebc   :  { %v545_v3 = vadd.f32 %v543_v2, %v1011_v7 }
 0xebe   :  { %v744_v4 = vmul.f32 -1.442695, %v545_v3 }
 0xec0   :  { %805 = vpow2.f32 %v744_v4 }
 0xec6   :  { %v806_v5 = vpop.eup %805 }
 0xec7   :  { %v550_v6 = vadd.f32 1.0, %v806_v5 }
 0xec9   :  { %807 = vrcp.f32 %v550_v6  ;;  %v562_v12 = vand.u32 2147483648, %v550_v6  ;;  %v560_v15 = vand.u32 2147483647, %v550_v6  ;;  %vm556_vm15 = vweird.f32 %v550_v6 }
 0xeca   :  { %809 = vtanh.f32 %v545_v3 }
 0xecb   :  { %v563_v17 = vor.u32 1.1754944e-38, %v562_v12  ;;  %vm561_vm2 = vcmp.eq.f32.partialorder %v560_v15, 8.507059e+37 }
 0xecf   :  { %v808_v8 = vpop.eup %807 }
 0xed0   :  { %v552_v9 = vmul.f32 %v808_v8, %v550_v6  ;;  %vm557_vm14 = vweird.f32 %v808_v8  ;;  %v810_v19 = vpop.eup %809 }
 0xed1   :  { %vm558_vm1 = vmor %vm556_vm15, %vm557_vm14 }
 0xed2   :  { %v553_v11 = vsub.f32 1.0, %v552_v9 }
 0xed4   :  { %v554_v14 = vmul.f32 %v808_v8, %v553_v11 }
 0xed6   :  { %v555_v16 = vadd.f32 %v808_v8, %v554_v14 }
 0xed8   :  { %v559_v18 = vsel %vm558_vm1, %v808_v8, %v555_v16 }
 0xed9   :  { %v564_v20 = vsel %vm561_vm2, %v563_v17, %v559_v18 }
 0xeda   :  { %v566_v21 = vsel %vm967_vm4, %v810_v19, %v564_v20 }
 0xedb   :  { %572 = vrot.lane.b32.xlu1 %v566_v21, %s876_s3  ;;  %v570_v24 = vmul.f32 %v568_v23, %v566_v21 }
 0xf4d   :  { %v573_v10 = vpop.permute.xlu1 %572 }
 0xf4e   :  { %v575_v22 = vmul.f32 %v573_v10, %v566_v21 }
 0xf50   :  { %577 = vrot.lane.b32.xlu2 %v575_v22, %s877_s13 }
 0xfaa   :  { %v578_v25 = vpop.permute.xlu2 %577 }
 0xfab   :  { %v580_v27 = vadd.f32 %v578_v25, %v570_v24 }
 0xfad   :  { %811 = vtanh.f32 %v580_v27  ;;  %v639_v52 = vrot.slane %v580_v27, 6 }
 0xfb3   :  { %v812_v28 = vpop.eup %811 }
 0xfb4   :  { %583 = vrot.lane.b32.xlu0 %v812_v28, %s876_s3 }
0x1026   :  { %v584_v29 = vpop.permute.xlu0 %583 }
0x1027   :  { %v586_v30 = vmul.f32 %v584_v29, %v566_v21 }
0x1029   :  { %v588_v31 = vrot.slane %v586_v30, 4 }
0x102b   :  { %589 = vrot.lane.b32.xlu1 %v588_v31, %s877_s13 }
0x109d   :  { %v590_v32 = vpop.permute.xlu1 %589 }
0x109e   :  { %745 = vmatmul.msk.f32.vlgmr.msra.gmra.mxu1 %vm59_vm0, %v590_v32 }
0x111b   :  { %v610_v33 = vpop.f32.mrf.mxu1 }
0x111c   :  { %v614_v34 = vrot.slane %v610_v33, 2 }
0x111e   :  { %v616_v35 = vadd.f32 %v614_v34, %v1011_v7 }
0x1120   :  { %v746_v36 = vmul.f32 -1.442695, %v616_v35 }
0x1122   :  { %813 = vpow2.f32 %v746_v36 }
0x1128   :  { %v814_v37 = vpop.eup %813 }
0x1129   :  { %v621_v38 = vadd.f32 1.0, %v814_v37 }
0x112b   :  { %815 = vrcp.f32 %v621_v38  ;;  %v633_v42 = vand.u32 2147483648, %v621_v38  ;;  %v631_v44 = vand.u32 2147483647, %v621_v38  ;;  %vm627_vm5 = vweird.f32 %v621_v38 }
0x112c   :  { %817 = vtanh.f32 %v616_v35 }
0x112d   :  { %v634_v46 = vor.u32 1.1754944e-38, %v633_v42  ;;  %vm632_vm7 = vcmp.eq.f32.partialorder %v631_v44, 8.507059e+37 }
0x1131   :  { %v816_v39 = vpop.eup %815 }
0x1132   :  { %v623_v40 = vmul.f32 %v816_v39, %v621_v38  ;;  %vm628_vm3 = vweird.f32 %v816_v39  ;;  %v818_v7 = vpop.eup %817 }
0x1133   :  { %vm629_vm6 = vmor %vm627_vm5, %vm628_vm3 }
0x1134   :  { %v624_v41 = vsub.f32 1.0, %v623_v40 }
0x1136   :  { %v625_v43 = vmul.f32 %v816_v39, %v624_v41 }
0x1138   :  { %v626_v45 = vadd.f32 %v816_v39, %v625_v43 }
0x113a   :  { %v630_v47 = vsel %vm629_vm6, %v816_v39, %v626_v45 }
0x113b   :  { %v635_v48 = vsel %vm632_vm7, %v634_v46, %v630_v47 }
0x113c   :  { %v637_v49 = vsel %vm967_vm4, %v818_v7, %v635_v48  ;;  %vm662_vm4 = vcmask 261126  }
0x113d   :  { %643 = vrot.lane.b32.xlu2 %v637_v49, %s876_s3  ;;  %v641_v53 = vmul.f32 %v639_v52, %v637_v49 }
0x1197   :  { %v644_v50 = vpop.permute.xlu2 %643 }
0x1198   :  { %v646_v51 = vmul.f32 %v644_v50, %v637_v49 }
0x119a   :  { %648 = vrot.lane.b32.xlu0 %v646_v51, %s877_s13 }
0x120c   :  { %v649_v54 = vpop.permute.xlu0 %648 }
0x120d   :  { %v651_v55 = vadd.f32 %v649_v54, %v641_v53 }
0x120f   :  { %819 = vtanh.f32 %v651_v55 }
0x1215   :  { %v820_v13 = vpop.eup %819 }
0x1216   :  { %654 = vrot.lane.b32.xlu1 %v820_v13, %s876_s3 }
0x121e   :  { %665 = vrot.lane.b32.xlu1 %v651_v55, %s878_s0 }
0x1288   :  { %v655_v59 = vpop.permute.xlu1 %654 }
0x1289   :  { %v657_v60 = vmul.f32 %v655_v59, %v637_v49 }
0x128b   :  { %v677_v61 = vrot.slane %v657_v60, 6  ;;  %659 = vrot.lane.b32.xlu0 %v657_v60, %s877_s13 }
0x128d   :  { %678 = vrot.lane.b32.xlu2 %v677_v61, %s877_s13 }
0x1290   :  { %v666_v62 = vpop.permute.xlu1 %665 }
0x1291   :  { %668 = vst.msk [vmem:[%s1080_s10 - $0x6] sm:$0xc0] %vm662_vm4, %v666_v62 }
0x12e7   :  { %v679_v63 = vpop.permute.xlu2 %678 }
0x12e8   :  { %747 = vmatmul.msk.f32.vlgmr.msra.gmra.mxu2 %vm59_vm0, %v679_v63 }
0x12fd   :  { %v660_v0 = vpop.permute.xlu0 %659 }
0x12fe   :  { %663 = vst.msk [vmem:[%s1079_s9 - $0x6] sm:$0xc0] %vm662_vm4, %v660_v0 }
0x136b   :  { %v699_v2 = vpop.f32.mrf.mxu2 }
0x136c   :  { %v700_v3 = vadd.f32 %v756_v1, %v699_v2 }
0x136e   :  { %703 = vst.msk [vmem:[#allocation5] sm:$0x3] %vm702_vm8, %v700_v3 }
0x136f   :  { %714 = dma.vmem_to_hbm [thread:$0]  %s710_s28, 32, %s712_s1, [#allocation4]  }
0x1370   :  { %871 = dma.done.wait [#allocation4], 32  }
0x1371   :  { %872 = vsyncadd [#allocation4], 4294967264 }
0x1372   :  { %727 = vsyncpa [#allocation3], 1 }
0x1373   :  { %728 = vsyncpa [#allocation4], 1 }

</bundles_post_ra>
